<compile_context>
chip_gen: v7x
topology: tpu7x:2x2x1
jax: 0.10.0
libtpu: 0.0.40
codegen_flags: <defaults>
</compile_context>

<pallas_src>
import functools

import jax
import jax.numpy as jnp
from jax.experimental import pallas as pl
from jax.experimental.pallas import tpu as pltpu

EPS = 1e-5
LANE = 128          # lane-padded feature width
L = 64              # linear_size
IN_SIZE = 28        # num_2d_coords (14 joints * 2)
OUT_SIZE = 42       # num_3d_coords (14 joints * 3)

# weight-stack slots
W_W3A, W_W3B, W_STA, W_STB, W_OUT, W_NEW, W_4, W_SCALE = range(8)
# row-stack slots
R_W3, R_ST, R_W4B, R_W6, R_B6, R_OUTB, R_NOB, R_PB, R_MULT = 0, 4, 8, 9, 10, 11, 12, 13, 14


# ----------------------------- fused Pallas kernel -----------------------------

def _fused_forward_kernel(x_ref, wb_ref, bsh_ref, ws_ref, rs_ref, out_ref):
    f32, bf16 = jnp.float32, jnp.bfloat16

    x = x_ref[...].astype(bf16)              # (B, 28) — unpadded input, bf16 MXU operand
    bsh = bsh_ref[...]                       # (2, 640) f32: base scale / shift (bias folded)
    rows = rs_ref[...]                       # (16, 128) f32 row stack (loaded once)

    # ---- five base projections as ONE block-diagonal (28 x 640) matmul + folded BN + ReLU ----
    z = jnp.dot(x, wb_ref[...], preferred_element_type=f32)           # (B, 640)
    z = jnp.maximum(z * bsh[0:1, :] + bsh[1:2, :], 0.0)
    y1 = (z[:, 0 * LANE:1 * LANE] + z[:, 1 * LANE:2 * LANE]
          + z[:, 2 * LANE:3 * LANE] + z[:, 3 * LANE:4 * LANE]
          + z[:, 4 * LANE:5 * LANE]) / 5.0                            # (B, 128), lanes>=64 are 0

    def block(v, wi, ri):
        # residual MLP block: v + relu(bn2(w2(relu(bn1(w1 v))))), linear bias folded into shift
        f1 = jnp.dot(v.astype(bf16), ws_ref[wi], preferred_element_type=f32)
        f1 = jnp.maximum(f1 * rows[ri + 0:ri + 1] + rows[ri + 1:ri + 2], 0.0)
        f2 = jnp.dot(f1.astype(bf16), ws_ref[wi + 1], preferred_element_type=f32)
        f2 = jnp.maximum(f2 * rows[ri + 2:ri + 3] + rows[ri + 3:ri + 4], 0.0)
        return v + f2, f1, f2

    y2, F1, F2 = block(y1, W_W3A, R_W3)                               # w3 residual block

    # new_out emitted directly into packed lanes [42, 84) (w2 columns shifted at prep time)
    new_out_p = jnp.dot(y2.astype(bf16), ws_ref[W_NEW], preferred_element_type=f32) \
        + rows[R_NOB:R_NOB + 1]

    # ---- w6 (64 -> 1) scores as VPU multiply + lane reduce (no 1-lane MXU matmuls) ----
    w6row = rows[R_W6:R_W6 + 1]
    b6 = rows[R_B6:R_B6 + 1, 0:1]                                     # (1, 1)
    w1v = jnp.sum(y1 * w6row, axis=-1, keepdims=True) + b6            # (B, 1)
    w2v = jnp.sum(F1 * w6row, axis=-1, keepdims=True) + b6
    w3v = jnp.sum(F2 * w6row, axis=-1, keepdims=True) + b6

    # shared w4 matrix (rows duplicated at [0,42) and [42,84)) — load once, reuse twice
    w4both = ws_ref[W_4]
    w4b = rows[R_W4B:R_W4B + 1]
    y = jnp.dot(new_out_p.astype(bf16), w4both, preferred_element_type=f32) + w4b

    # The reference loops every stage over the SAME y and keeps only the last y3
    # -> computing only the last stage block is semantically identical.
    y3, _, _ = block(y, W_STA, R_ST)

    # ---- torch.dist == batch-global Frobenius norm (padded lanes are exactly zero) ----
    def dist(a, b):
        d = a - b
        return jnp.sqrt(jnp.sum(d * d))

    a1 = 1.0 - jax.nn.sigmoid(w1v * dist(y1, y3))
    a2 = 1.0 - jax.nn.sigmoid(w2v * dist(F1, y3))
    a3 = 1.0 - jax.nn.sigmoid(w3v * dist(F2, y3))
    y_att = y3 + a1 * y1 + a2 * F1 + a3 * F2

    # out in packed lanes [0, 42)
    out_p = jnp.dot(y_att.astype(bf16), ws_ref[W_OUT], preferred_element_type=f32) \
        + rows[R_OUTB:R_OUTB + 1]
    h = jnp.dot(out_p.astype(bf16), w4both, preferred_element_type=f32) + w4b
    h_out, _, _ = block(h, W_W3A, R_W3)                               # w3 block again
    # scale in packed lanes [84, 112) (p columns shifted at prep time)
    scale_p = jnp.dot(h_out.astype(bf16), ws_ref[W_SCALE], preferred_element_type=f32) \
        + rows[R_PB:R_PB + 1]

    # lane-dense packed output [out | new_out | scale | 0]; unnorm multiplier folded into R_MULT
    out_ref[...] = (out_p + new_out_p + scale_p) * rows[R_MULT:R_MULT + 1]


# ------------------------------ pallas_call wrapper ------------------------------

def _full_spec(shape):
    n = len(shape)
    return pl.BlockSpec(shape, lambda *_: (0,) * n)


@jax.jit
def linear_model_forward(kparams, x):
    """kparams = (wb, base_sh, wstack, rows) from prepare_kernel_params."""
    wb, base_sh, wstack, rows = kparams
    B = x.shape[0]
    inputs = [x.astype(jnp.float32), wb, base_sh, wstack, rows]
    in_specs = [_full_spec(a.shape) for a in inputs]

    in_bytes = sum(a.size * a.dtype.itemsize for a in inputs)
    cost = pl.CostEstimate(
        flops=2 * B * (IN_SIZE * 5 * LANE + 11 * LANE * LANE),
        transcendentals=3 * B + 3,
        bytes_accessed=in_bytes + B * LANE * 4,
    )

    packed = pl.pallas_call(
        _fused_forward_kernel,
        out_shape=jax.ShapeDtypeStruct((B, LANE), jnp.float32),
        grid=(1,),
        in_specs=in_specs,
        out_specs=_full_spec((B, LANE)),
        compiler_params=pltpu.CompilerParams(
            dimension_semantics=("arbitrary",),
            vmem_limit_bytes=32 * 1024 * 1024),
        cost_estimate=cost,
    )(*inputs)

    out = packed[:, 0:OUT_SIZE]
    new_out = packed[:, OUT_SIZE:2 * OUT_SIZE]
    scale = packed[:, 2 * OUT_SIZE:2 * OUT_SIZE + IN_SIZE]
    return out, scale, new_out


# --------------------------- parameter set-up & packing ---------------------------

def init_linear(key, fan_in, fan_out):
    kw, kb = jax.random.split(key)
    bound = 1.0 / jnp.sqrt(float(fan_in))
    w = jax.random.uniform(kw, (fan_out, fan_in), jnp.float32, -bound, bound)
    b = jax.random.uniform(kb, (fan_out,), jnp.float32, -bound, bound)
    return w.T, b  # store [in, out]


def init_bn(key, n):
    k1, k2, k3 = jax.random.split(key, 3)
    gamma = 1.0 + 0.1 * jax.random.normal(k1, (n,), jnp.float32)
    beta = 0.1 * jax.random.normal(k2, (n,), jnp.float32)
    rmean = 0.1 * jax.random.normal(k3, (n,), jnp.float32)
    rvar = jnp.ones((n,), jnp.float32)
    scale = gamma / jnp.sqrt(rvar + EPS)
    shift = beta - rmean * scale
    return scale, shift


def init_linear_block(key, l_size):
    ks = jax.random.split(key, 4)
    w1, b1 = init_linear(ks[0], l_size, l_size)
    s1, h1 = init_bn(ks[1], l_size)
    w2, b2 = init_linear(ks[2], l_size, l_size)
    s2, h2 = init_bn(ks[3], l_size)
    return dict(w1=w1, b1=b1, bn1_scale=s1, bn1_shift=h1,
                w2=w2, b2=b2, bn2_scale=s2, bn2_shift=h2)


def init_model(key, input_size, output_size, linear_size, num_stage, unnorm_init):
    ks = jax.random.split(key, 12 + num_stage)
    p = {}
    p['w1'] = init_linear(ks[0], input_size, linear_size)   # unused in forward, kept for parity
    p['bn1_scale'], p['bn1_shift'] = init_bn(ks[1], linear_size)
    p['w2'] = init_linear(ks[2], linear_size, output_size)
    p['ws'] = init_linear(ks[3], linear_size, 1)             # unused in forward
    p['w3'] = init_linear_block(ks[4], linear_size)
    p['w4'] = init_linear(ks[5], output_size, linear_size)
    p['w6'] = init_linear(ks[6], linear_size, 1)
    p['n1'] = init_linear(ks[7], 2 * 3, linear_size)
    p['n2'] = init_linear(ks[8], 2 * 2, linear_size)
    p['p'] = init_linear(ks[9], linear_size, input_size)
    p['mult'] = jnp.ones((output_size,), jnp.float32) * unnorm_init
    p['stages'] = [init_linear_block(ks[12 + i], linear_size) for i in range(num_stage)]
    return p


def prepare_kernel_params(p, *, unnorm_op=True):
    """Pack the parameters for the fused kernel:
       - base n1/n2 + bn1 fused into a (28, 640) block-diagonal weight + (2, 640) scale/shift,
       - one (8, 128, 128) bf16 weight stack with output columns / input row-bands pre-shifted
         so the kernel emits a lane-dense packed [out | new_out | scale] output,
       - one (16, 128) f32 row stack (BN scale/shift with Linear biases folded in, biases,
         w6 row + bias, unnorm multiplier applied per output lane)."""
    f32, bf16 = jnp.float32, jnp.bfloat16

    wn1, bn1b = p['n1']          # (6, 64), (64,)
    wn2, bn2b = p['n2']          # (4, 64), (64,)
    s1, h1 = p['bn1_scale'], p['bn1_shift']

    wb = jnp.zeros((IN_SIZE, 5 * LANE), f32)
    sb = jnp.zeros((1, 5 * LANE), f32)
    hb = jnp.zeros((1, 5 * LANE), f32)
    for c in range(5):
        w, b, k = (wn1, bn1b, 6) if c < 4 else (wn2, bn2b, 4)
        r0 = 6 * c
        wb = wb.at[r0:r0 + k, c * LANE:c * LANE + L].set(w)
        sb = sb.at[0, c * LANE:c * LANE + L].set(s1)
        hb = hb.at[0, c * LANE:c * LANE + L].set(b * s1 + h1)
    base_sh = jnp.concatenate([sb, hb], axis=0)                        # (2, 640) f32

    def pad_w(w, row0=0, col0=0):
        out = jnp.zeros((LANE, LANE), f32)
        return out.at[row0:row0 + w.shape[0], col0:col0 + w.shape[1]].set(w)

    def pad_row(v, col0=0):
        return jnp.zeros((LANE,), f32).at[col0:col0 + v.shape[0]].set(v)

    w3, st = p['w3'], p['stages'][-1]                # only the last stage is observable
    w2w, w2b = p['w2']
    w4w, w4b = p['w4']
    w6w, w6b = p['w6']
    pw, pb = p['p']

    # w4 rows duplicated at [0,42) (consumes `out`) and [42,84) (consumes the shifted new_out)
    w4both = jnp.zeros((LANE, LANE), f32)
    w4both = w4both.at[0:OUT_SIZE, 0:L].set(w4w)
    w4both = w4both.at[OUT_SIZE:2 * OUT_SIZE, 0:L].set(w4w)

    wstack = jnp.stack([
        pad_w(w3['w1']), pad_w(w3['w2']),            # W_W3A, W_W3B
        pad_w(st['w1']), pad_w(st['w2']),            # W_STA, W_STB
        pad_w(w2w, col0=0),                          # W_OUT   : out   -> lanes [0, 42)
        pad_w(w2w, col0=OUT_SIZE),                   # W_NEW   : new_out -> lanes [42, 84)
        w4both,                                      # W_4
        pad_w(pw, col0=2 * OUT_SIZE),                # W_SCALE : scale -> lanes [84, 112)
    ]).astype(bf16)                                  # (8, 128, 128) bf16

    post_mult = jnp.zeros((LANE,), f32).at[0:2 * OUT_SIZE + IN_SIZE].set(1.0)
    if unnorm_op:
        post_mult = post_mult.at[0:OUT_SIZE].set(p['mult'])

    rows = jnp.zeros((16, LANE), f32)
    rows = rows.at[R_W3 + 0].set(pad_row(w3['bn1_scale']))
    rows = rows.at[R_W3 + 1].set(pad_row(w3['b1'] * w3['bn1_scale'] + w3['bn1_shift']))
    rows = rows.at[R_W3 + 2].set(pad_row(w3['bn2_scale']))
    rows = rows.at[R_W3 + 3].set(pad_row(w3['b2'] * w3['bn2_scale'] + w3['bn2_shift']))
    rows = rows.at[R_ST + 0].set(pad_row(st['bn1_scale']))
    rows = rows.at[R_ST + 1].set(pad_row(st['b1'] * st['bn1_scale'] + st['bn1_shift']))
    rows = rows.at[R_ST + 2].set(pad_row(st['bn2_scale']))
    rows = rows.at[R_ST + 3].set(pad_row(st['b2'] * st['bn2_scale'] + st['bn2_shift']))
    rows = rows.at[R_W4B].set(pad_row(w4b))
    rows = rows.at[R_W6].set(pad_row(w6w[:, 0]))
    rows = rows.at[R_B6, 0].set(w6b[0])
    rows = rows.at[R_OUTB].set(pad_row(w2b, col0=0))
    rows = rows.at[R_NOB].set(pad_row(w2b, col0=OUT_SIZE))
    rows = rows.at[R_PB].set(pad_row(pb, col0=2 * OUT_SIZE))
    rows = rows.at[R_MULT].set(post_mult)

    return wb.astype(bf16), base_sh, wstack, rows


# ------------------------------ pure-JAX references ------------------------------

def _ref_forward_f32(p, x, num_stage, unnorm_op):
    """Faithful f32/HIGHEST-precision reference of the PyTorch forward (eval mode)."""
    hp = jax.lax.Precision.HIGHEST

    def lin(v, wb):
        return jnp.dot(v, wb[0], precision=hp) + wb[1]

    def bnrelu(v, s, h):
        return jnp.maximum(v * s + h, 0.0)

    def block(v, blk):
        f1 = bnrelu(jnp.dot(v, blk['w1'], precision=hp) + blk['b1'],
                    blk['bn1_scale'], blk['bn1_shift'])
        f2 = bnrelu(jnp.dot(f1, blk['w2'], precision=hp) + blk['b2'],
                    blk['bn2_scale'], blk['bn2_shift'])
        return v + f2, f1, f2

    gs = [x[:, 0:6], x[:, 6:12], x[:, 12:18], x[:, 18:24], x[:, 24:28]]
    outs = []
    for i, g in enumerate(gs):
        wb = p['n1'] if i < 4 else p['n2']
        outs.append(bnrelu(lin(g, wb), p['bn1_scale'], p['bn1_shift']))
    y1 = sum(outs) / 5.0

    y2, F1, F2 = block(y1, p['w3'])
    new_out = lin(y2, p['w2'])
    w1v, w2v, w3v = lin(y1, p['w6']), lin(F1, p['w6']), lin(F2, p['w6'])
    y = lin(new_out, p['w4'])
    y3 = None
    for i in range(num_stage):          # faithful: all stages read the same y
        y3, _, _ = block(y, p['stages'][i])

    def dist(a, b):
        return jnp.sqrt(jnp.sum((a - b) ** 2))

    a1 = 1.0 - jax.nn.sigmoid(w1v * dist(y1, y3))
    a2 = 1.0 - jax.nn.sigmoid(w2v * dist(F1, y3))
    a3 = 1.0 - jax.nn.sigmoid(w3v * dist(F2, y3))
    yy = y3 + a1 * y1 + a2 * F1 + a3 * F2

    out = lin(yy, p['w2'])
    h = lin(out, p['w4'])
    h_out, _, _ = block(h, p['w3'])
    scale = lin(h_out, p['p'])
    if unnorm_op:
        out = out * p['mult']
    return out, scale, new_out


def _ref_forward_bf16(p, x, num_stage, unnorm_op):
    """Reference that mirrors the kernel's precision policy exactly:
       bf16 MXU operands + f32 accumulation, all VPU math in f32."""
    bf16, f32 = jnp.bfloat16, jnp.float32

    def mm(a, w):
        return jnp.dot(a.astype(bf16), w.astype(bf16), preferred_element_type=f32)

    def bnrelu(v, s, h):
        return jnp.maximum(v * s + h, 0.0)

    def block(v, blk):
        f1 = bnrelu(mm(v, blk['w1']), blk['bn1_scale'],
                    blk['b1'] * blk['bn1_scale'] + blk['bn1_shift'])
        f2 = bnrelu(mm(f1, blk['w2']), blk['bn2_scale'],
                    blk['b2'] * blk['bn2_scale'] + blk['bn2_shift'])
        return v + f2, f1, f2

    s1, h1 = p['bn1_scale'], p['bn1_shift']
    gs = [x[:, 0:6], x[:, 6:12], x[:, 12:18], x[:, 18:24], x[:, 24:28]]
    outs = []
    for i, g in enumerate(gs):
        w, b = p['n1'] if i < 4 else p['n2']
        outs.append(bnrelu(mm(g, w), s1, b * s1 + h1))
    y1 = sum(outs) / 5.0

    y2, F1, F2 = block(y1, p['w3'])
    w2w, w2b = p['w2']
    w4w, w4b = p['w4']
    w6w, w6b = p['w6']
    pw, pb = p['p']

    new_out = mm(y2, w2w) + w2b
    w6r = w6w[:, 0]
    w1v = jnp.sum(y1 * w6r, axis=-1, keepdims=True) + w6b[0]   # f32, like the kernel's VPU path
    w2v = jnp.sum(F1 * w6r, axis=-1, keepdims=True) + w6b[0]
    w3v = jnp.sum(F2 * w6r, axis=-1, keepdims=True) + w6b[0]
    y = mm(new_out, w4w) + w4b
    y3 = None
    for i in range(num_stage):
        y3, _, _ = block(y, p['stages'][i])

    def dist(a, b):
        return jnp.sqrt(jnp.sum((a - b) ** 2))

    a1 = 1.0 - jax.nn.sigmoid(w1v * dist(y1, y3))
    a2 = 1.0 - jax.nn.sigmoid(w2v * dist(F1, y3))
    a3 = 1.0 - jax.nn.sigmoid(w3v * dist(F2, y3))
    yy = y3 + a1 * y1 + a2 * F1 + a3 * F2

    out = mm(yy, w2w) + w2b
    h = mm(out, w4w) + w4b
    h_out, _, _ = block(h, p['w3'])
    scale = mm(h_out, pw) + pb
    if unnorm_op:
        out = out * p['mult']
    return out, scale, new_out


# ---------------------------------- main -----------------------------------

if __name__ == "__main__":
    NUM_STAGE = 2
    UNNORM_OP = True
    UNNORM_INIT = 0.5
    BATCH = 8

    key = jax.random.PRNGKey(0)
    kp, kx = jax.random.split(key)
    params = init_model(kp, IN_SIZE, OUT_SIZE, L, NUM_STAGE, UNNORM_INIT)
    kparams = prepare_kernel_params(params, unnorm_op=UNNORM_OP)
    x = jax.random.normal(kx, (BATCH, IN_SIZE), jnp.float32)

    out, scale, new_out = linear_model_forward(kparams, x)
    jax.block_until_ready((out, scale, new_out))

    assert out.shape == (BATCH, OUT_SIZE)
    assert scale.shape == (BATCH, IN_SIZE)
    assert new_out.shape == (BATCH, OUT_SIZE)

    # tight check vs. a precision-matched (bf16 MXU / f32 VPU) pure-JAX reference
    m_out, m_scale, m_new = _ref_forward_bf16(params, x, NUM_STAGE, UNNORM_OP)
    assert jnp.allclose(out, m_out, rtol=2e-3, atol=2e-3)
    assert jnp.allclose(scale, m_scale, rtol=2e-3, atol=2e-3)
    assert jnp.allclose(new_out, m_new, rtol=2e-3, atol=2e-3)

    # loose check vs. the full-f32 (HIGHEST precision) reference of the original module
    r_out, r_scale, r_new = _ref_forward_f32(params, x, NUM_STAGE, UNNORM_OP)
    assert jnp.allclose(out, r_out, rtol=1e-1, atol=5e-2)
    assert jnp.allclose(scale, r_scale, rtol=1e-1, atol=5e-2)
    assert jnp.allclose(new_out, r_new, rtol=1e-1, atol=5e-2)

    print("KERNEL_OK")
</pallas_src>

<mosaic_0001>
module attributes {stable_mosaic.version = 11 : i64} {
  func.func @_fused_forward_kernel(%arg0: i32, %arg1: memref<8x28xf32, #tpu.memory_space<vmem>>, %arg2: memref<28x640xbf16, #tpu.memory_space<vmem>>, %arg3: memref<2x640xf32, #tpu.memory_space<vmem>>, %arg4: memref<8x128x128xbf16, #tpu.memory_space<vmem>>, %arg5: memref<16x128xf32, #tpu.memory_space<vmem>>, %arg6: memref<8x128xf32, #tpu.memory_space<vmem>>) attributes {dimension_semantics = [#tpu.dimension_semantics<arbitrary>], iteration_bounds = array<i64: 1>, scalar_prefetch = 0 : i64, scratch_operands = 0 : i64, tpu.core_type = #tpu.core_type<tc>, window_params = [{pipeline_mode = #tpu.pipeline_mode<synchronous>, transform_indices = @transform_0, window_bounds = array<i64: 8, 28>}, {pipeline_mode = #tpu.pipeline_mode<synchronous>, transform_indices = @transform_1, window_bounds = array<i64: 28, 640>}, {pipeline_mode = #tpu.pipeline_mode<synchronous>, transform_indices = @transform_2, window_bounds = array<i64: 2, 640>}, {pipeline_mode = #tpu.pipeline_mode<synchronous>, transform_indices = @transform_3, window_bounds = array<i64: 8, 128, 128>}, {pipeline_mode = #tpu.pipeline_mode<synchronous>, transform_indices = @transform_4, window_bounds = array<i64: 16, 128>}, {pipeline_mode = #tpu.pipeline_mode<synchronous>, transform_indices = @transform_5, window_bounds = array<i64: 8, 128>}]} {
    %c0 = arith.constant 0 : index
    %c0_0 = arith.constant 0 : index
    %0 = vector.load %arg1[%c0, %c0_0] : memref<8x28xf32, #tpu.memory_space<vmem>>, vector<8x28xf32>
    %1 = arith.truncf %0 : vector<8x28xf32> to vector<8x28xbf16>
    %c0_1 = arith.constant 0 : index
    %c0_2 = arith.constant 0 : index
    %2 = vector.load %arg3[%c0_1, %c0_2] : memref<2x640xf32, #tpu.memory_space<vmem>>, vector<2x640xf32>
    %c0_3 = arith.constant 0 : index
    %c0_4 = arith.constant 0 : index
    %3 = vector.load %arg5[%c0_3, %c0_4] : memref<16x128xf32, #tpu.memory_space<vmem>>, vector<16x128xf32>
    %c0_5 = arith.constant 0 : index
    %c0_6 = arith.constant 0 : index
    %4 = vector.load %arg2[%c0_5, %c0_6] : memref<28x640xbf16, #tpu.memory_space<vmem>>, vector<28x640xbf16>
    %cst = arith.constant dense<0.000000e+00> : vector<8x640xf32>
    %5 = tpu.matmul %1, %4, %cst {dimension_numbers = #tpu.dot_dimension_numbers<[1], [0], [0], [1], [0, 0, 1, 1], [], []>} : vector<8x28xbf16>, vector<28x640xbf16>, vector<8x640xf32> -> vector<8x640xf32>
    %6 = vector.extract_strided_slice %2 {offsets = [0, 0], sizes = [1, 640], strides = [1, 1]} : vector<2x640xf32> to vector<1x640xf32>
    %7 = vector.broadcast %6 : vector<1x640xf32> to vector<8x640xf32>
    %8 = arith.mulf %5, %7 : vector<8x640xf32>
    %9 = vector.extract_strided_slice %2 {offsets = [1, 0], sizes = [1, 640], strides = [1, 1]} : vector<2x640xf32> to vector<1x640xf32>
    %10 = vector.broadcast %9 : vector<1x640xf32> to vector<8x640xf32>
    %11 = arith.addf %8, %10 : vector<8x640xf32>
    %cst_7 = arith.constant 0.000000e+00 : f32
    %12 = vector.broadcast %cst_7 : f32 to vector<8x640xf32>
    %13 = arith.maximumf %11, %12 : vector<8x640xf32>
    %14 = vector.extract_strided_slice %13 {offsets = [0, 0], sizes = [8, 128], strides = [1, 1]} : vector<8x640xf32> to vector<8x128xf32>
    %15 = vector.extract_strided_slice %13 {offsets = [0, 128], sizes = [8, 128], strides = [1, 1]} : vector<8x640xf32> to vector<8x128xf32>
    %16 = arith.addf %14, %15 : vector<8x128xf32>
    %17 = vector.extract_strided_slice %13 {offsets = [0, 256], sizes = [8, 128], strides = [1, 1]} : vector<8x640xf32> to vector<8x128xf32>
    %18 = arith.addf %16, %17 : vector<8x128xf32>
    %19 = vector.extract_strided_slice %13 {offsets = [0, 384], sizes = [8, 128], strides = [1, 1]} : vector<8x640xf32> to vector<8x128xf32>
    %20 = arith.addf %18, %19 : vector<8x128xf32>
    %21 = vector.extract_strided_slice %13 {offsets = [0, 512], sizes = [8, 128], strides = [1, 1]} : vector<8x640xf32> to vector<8x128xf32>
    %22 = arith.addf %20, %21 : vector<8x128xf32>
    %cst_8 = arith.constant 5.000000e+00 : f32
    %23 = vector.broadcast %cst_8 : f32 to vector<8x128xf32>
    %24 = arith.divf %22, %23 : vector<8x128xf32>
    %25 = arith.truncf %24 : vector<8x128xf32> to vector<8x128xbf16>
    %c0_9 = arith.constant 0 : index
    %c0_10 = arith.constant 0 : index
    %c0_11 = arith.constant 0 : index
    %26 = vector.load %arg4[%c0_9, %c0_10, %c0_11] : memref<8x128x128xbf16, #tpu.memory_space<vmem>>, vector<1x128x128xbf16>
    %27 = vector.shape_cast %26 : vector<1x128x128xbf16> to vector<128x128xbf16>
    %cst_12 = arith.constant dense<0.000000e+00> : vector<8x128xf32>
    %28 = tpu.matmul %25, %27, %cst_12 {dimension_numbers = #tpu.dot_dimension_numbers<[1], [0], [0], [1], [0, 0, 1, 1], [], []>} : vector<8x128xbf16>, vector<128x128xbf16>, vector<8x128xf32> -> vector<8x128xf32>
    %29 = vector.extract_strided_slice %3 {offsets = [0, 0], sizes = [1, 128], strides = [1, 1]} : vector<16x128xf32> to vector<1x128xf32>
    %30 = vector.broadcast %29 : vector<1x128xf32> to vector<8x128xf32>
    %31 = arith.mulf %28, %30 : vector<8x128xf32>
    %32 = vector.extract_strided_slice %3 {offsets = [1, 0], sizes = [1, 128], strides = [1, 1]} : vector<16x128xf32> to vector<1x128xf32>
    %33 = vector.broadcast %32 : vector<1x128xf32> to vector<8x128xf32>
    %34 = arith.addf %31, %33 : vector<8x128xf32>
    %cst_13 = arith.constant 0.000000e+00 : f32
    %35 = vector.broadcast %cst_13 : f32 to vector<8x128xf32>
    %36 = arith.maximumf %34, %35 : vector<8x128xf32>
    %37 = arith.truncf %36 : vector<8x128xf32> to vector<8x128xbf16>
    %c1 = arith.constant 1 : index
    %c0_14 = arith.constant 0 : index
    %c0_15 = arith.constant 0 : index
    %38 = vector.load %arg4[%c1, %c0_14, %c0_15] : memref<8x128x128xbf16, #tpu.memory_space<vmem>>, vector<1x128x128xbf16>
    %39 = vector.shape_cast %38 : vector<1x128x128xbf16> to vector<128x128xbf16>
    %cst_16 = arith.constant dense<0.000000e+00> : vector<8x128xf32>
    %40 = tpu.matmul %37, %39, %cst_16 {dimension_numbers = #tpu.dot_dimension_numbers<[1], [0], [0], [1], [0, 0, 1, 1], [], []>} : vector<8x128xbf16>, vector<128x128xbf16>, vector<8x128xf32> -> vector<8x128xf32>
    %41 = vector.extract_strided_slice %3 {offsets = [2, 0], sizes = [1, 128], strides = [1, 1]} : vector<16x128xf32> to vector<1x128xf32>
    %42 = vector.broadcast %41 : vector<1x128xf32> to vector<8x128xf32>
    %43 = arith.mulf %40, %42 : vector<8x128xf32>
    %44 = vector.extract_strided_slice %3 {offsets = [3, 0], sizes = [1, 128], strides = [1, 1]} : vector<16x128xf32> to vector<1x128xf32>
    %45 = vector.broadcast %44 : vector<1x128xf32> to vector<8x128xf32>
    %46 = arith.addf %43, %45 : vector<8x128xf32>
    %cst_17 = arith.constant 0.000000e+00 : f32
    %47 = vector.broadcast %cst_17 : f32 to vector<8x128xf32>
    %48 = arith.maximumf %46, %47 : vector<8x128xf32>
    %49 = arith.addf %24, %48 : vector<8x128xf32>
    %50 = arith.truncf %49 : vector<8x128xf32> to vector<8x128xbf16>
    %c5 = arith.constant 5 : index
    %c0_18 = arith.constant 0 : index
    %c0_19 = arith.constant 0 : index
    %51 = vector.load %arg4[%c5, %c0_18, %c0_19] : memref<8x128x128xbf16, #tpu.memory_space<vmem>>, vector<1x128x128xbf16>
    %52 = vector.shape_cast %51 : vector<1x128x128xbf16> to vector<128x128xbf16>
    %cst_20 = arith.constant dense<0.000000e+00> : vector<8x128xf32>
    %53 = tpu.matmul %50, %52, %cst_20 {dimension_numbers = #tpu.dot_dimension_numbers<[1], [0], [0], [1], [0, 0, 1, 1], [], []>} : vector<8x128xbf16>, vector<128x128xbf16>, vector<8x128xf32> -> vector<8x128xf32>
    %54 = vector.extract_strided_slice %3 {offsets = [12, 0], sizes = [1, 128], strides = [1, 1]} : vector<16x128xf32> to vector<1x128xf32>
    %55 = vector.broadcast %54 : vector<1x128xf32> to vector<8x128xf32>
    %56 = arith.addf %53, %55 : vector<8x128xf32>
    %57 = vector.extract_strided_slice %3 {offsets = [9, 0], sizes = [1, 128], strides = [1, 1]} : vector<16x128xf32> to vector<1x128xf32>
    %58 = vector.extract_strided_slice %3 {offsets = [10, 0], sizes = [1, 1], strides = [1, 1]} : vector<16x128xf32> to vector<1x1xf32>
    %59 = vector.broadcast %57 : vector<1x128xf32> to vector<8x128xf32>
    %60 = arith.mulf %24, %59 : vector<8x128xf32>
    %cst_21 = arith.constant dense<0.000000e+00> : vector<8xf32>
    %61 = vector.multi_reduction <add>, %60, %cst_21 [1] : vector<8x128xf32> to vector<8xf32>
    %62 = vector.shape_cast %61 : vector<8xf32> to vector<8x1xf32>
    %63 = vector.broadcast %58 : vector<1x1xf32> to vector<8x1xf32>
    %64 = arith.addf %62, %63 : vector<8x1xf32>
    %65 = vector.broadcast %57 : vector<1x128xf32> to vector<8x128xf32>
    %66 = arith.mulf %36, %65 : vector<8x128xf32>
    %cst_22 = arith.constant dense<0.000000e+00> : vector<8xf32>
    %67 = vector.multi_reduction <add>, %66, %cst_22 [1] : vector<8x128xf32> to vector<8xf32>
    %68 = vector.shape_cast %67 : vector<8xf32> to vector<8x1xf32>
    %69 = vector.broadcast %58 : vector<1x1xf32> to vector<8x1xf32>
    %70 = arith.addf %68, %69 : vector<8x1xf32>
    %71 = vector.broadcast %57 : vector<1x128xf32> to vector<8x128xf32>
    %72 = arith.mulf %48, %71 : vector<8x128xf32>
    %cst_23 = arith.constant dense<0.000000e+00> : vector<8xf32>
    %73 = vector.multi_reduction <add>, %72, %cst_23 [1] : vector<8x128xf32> to vector<8xf32>
    %74 = vector.shape_cast %73 : vector<8xf32> to vector<8x1xf32>
    %75 = vector.broadcast %58 : vector<1x1xf32> to vector<8x1xf32>
    %76 = arith.addf %74, %75 : vector<8x1xf32>
    %c6 = arith.constant 6 : index
    %c0_24 = arith.constant 0 : index
    %c0_25 = arith.constant 0 : index
    %77 = vector.load %arg4[%c6, %c0_24, %c0_25] : memref<8x128x128xbf16, #tpu.memory_space<vmem>>, vector<1x128x128xbf16>
    %78 = vector.shape_cast %77 : vector<1x128x128xbf16> to vector<128x128xbf16>
    %79 = vector.extract_strided_slice %3 {offsets = [8, 0], sizes = [1, 128], strides = [1, 1]} : vector<16x128xf32> to vector<1x128xf32>
    %80 = arith.truncf %56 : vector<8x128xf32> to vector<8x128xbf16>
    %cst_26 = arith.constant dense<0.000000e+00> : vector<8x128xf32>
    %81 = tpu.matmul %80, %78, %cst_26 {dimension_numbers = #tpu.dot_dimension_numbers<[1], [0], [0], [1], [0, 0, 1, 1], [], []>} : vector<8x128xbf16>, vector<128x128xbf16>, vector<8x128xf32> -> vector<8x128xf32>
    %82 = vector.broadcast %79 : vector<1x128xf32> to vector<8x128xf32>
    %83 = arith.addf %81, %82 : vector<8x128xf32>
    %84 = arith.truncf %83 : vector<8x128xf32> to vector<8x128xbf16>
    %c2 = arith.constant 2 : index
    %c0_27 = arith.constant 0 : index
    %c0_28 = arith.constant 0 : index
    %85 = vector.load %arg4[%c2, %c0_27, %c0_28] : memref<8x128x128xbf16, #tpu.memory_space<vmem>>, vector<1x128x128xbf16>
    %86 = vector.shape_cast %85 : vector<1x128x128xbf16> to vector<128x128xbf16>
    %cst_29 = arith.constant dense<0.000000e+00> : vector<8x128xf32>
    %87 = tpu.matmul %84, %86, %cst_29 {dimension_numbers = #tpu.dot_dimension_numbers<[1], [0], [0], [1], [0, 0, 1, 1], [], []>} : vector<8x128xbf16>, vector<128x128xbf16>, vector<8x128xf32> -> vector<8x128xf32>
    %88 = vector.extract_strided_slice %3 {offsets = [4, 0], sizes = [1, 128], strides = [1, 1]} : vector<16x128xf32> to vector<1x128xf32>
    %89 = vector.broadcast %88 : vector<1x128xf32> to vector<8x128xf32>
    %90 = arith.mulf %87, %89 : vector<8x128xf32>
    %91 = vector.extract_strided_slice %3 {offsets = [5, 0], sizes = [1, 128], strides = [1, 1]} : vector<16x128xf32> to vector<1x128xf32>
    %92 = vector.broadcast %91 : vector<1x128xf32> to vector<8x128xf32>
    %93 = arith.addf %90, %92 : vector<8x128xf32>
    %cst_30 = arith.constant 0.000000e+00 : f32
    %94 = vector.broadcast %cst_30 : f32 to vector<8x128xf32>
    %95 = arith.maximumf %93, %94 : vector<8x128xf32>
    %96 = arith.truncf %95 : vector<8x128xf32> to vector<8x128xbf16>
    %c3 = arith.constant 3 : index
    %c0_31 = arith.constant 0 : index
    %c0_32 = arith.constant 0 : index
    %97 = vector.load %arg4[%c3, %c0_31, %c0_32] : memref<8x128x128xbf16, #tpu.memory_space<vmem>>, vector<1x128x128xbf16>
    %98 = vector.shape_cast %97 : vector<1x128x128xbf16> to vector<128x128xbf16>
    %cst_33 = arith.constant dense<0.000000e+00> : vector<8x128xf32>
    %99 = tpu.matmul %96, %98, %cst_33 {dimension_numbers = #tpu.dot_dimension_numbers<[1], [0], [0], [1], [0, 0, 1, 1], [], []>} : vector<8x128xbf16>, vector<128x128xbf16>, vector<8x128xf32> -> vector<8x128xf32>
    %100 = vector.extract_strided_slice %3 {offsets = [6, 0], sizes = [1, 128], strides = [1, 1]} : vector<16x128xf32> to vector<1x128xf32>
    %101 = vector.broadcast %100 : vector<1x128xf32> to vector<8x128xf32>
    %102 = arith.mulf %99, %101 : vector<8x128xf32>
    %103 = vector.extract_strided_slice %3 {offsets = [7, 0], sizes = [1, 128], strides = [1, 1]} : vector<16x128xf32> to vector<1x128xf32>
    %104 = vector.broadcast %103 : vector<1x128xf32> to vector<8x128xf32>
    %105 = arith.addf %102, %104 : vector<8x128xf32>
    %cst_34 = arith.constant 0.000000e+00 : f32
    %106 = vector.broadcast %cst_34 : f32 to vector<8x128xf32>
    %107 = arith.maximumf %105, %106 : vector<8x128xf32>
    %108 = arith.addf %83, %107 : vector<8x128xf32>
    %109 = arith.subf %24, %108 : vector<8x128xf32>
    %110 = arith.mulf %109, %109 : vector<8x128xf32>
    %111 = vector.shape_cast %110 : vector<8x128xf32> to vector<1x8x128xf32>
    %cst_35 = arith.constant dense<0.000000e+00> : vector<1xf32>
    %112 = vector.multi_reduction <add>, %111, %cst_35 [1, 2] : vector<1x8x128xf32> to vector<1xf32>
    %113 = vector.shape_cast %112 : vector<1xf32> to vector<1x1x1xf32>
    %114 = vector.extract %113[0, 0, 0] : f32 from vector<1x1x1xf32>
    %115 = math.sqrt %114 : f32
    %116 = vector.broadcast %115 : f32 to vector<8x1xf32>
    %117 = arith.mulf %64, %116 : vector<8x1xf32>
    %118 = arith.negf %117 : vector<8x1xf32>
    %119 = math.exp %118 : vector<8x1xf32>
    %cst_36 = arith.constant 1.000000e+00 : f32
    %120 = vector.broadcast %cst_36 : f32 to vector<8x1xf32>
    %121 = arith.addf %120, %119 : vector<8x1xf32>
    %122 = arith.divf %120, %121 : vector<8x1xf32>
    %cst_37 = arith.constant 1.000000e+00 : f32
    %123 = vector.broadcast %cst_37 : f32 to vector<8x1xf32>
    %124 = arith.subf %123, %122 : vector<8x1xf32>
    %125 = arith.subf %36, %108 : vector<8x128xf32>
    %126 = arith.mulf %125, %125 : vector<8x128xf32>
    %127 = vector.shape_cast %126 : vector<8x128xf32> to vector<1x8x128xf32>
    %cst_38 = arith.constant dense<0.000000e+00> : vector<1xf32>
    %128 = vector.multi_reduction <add>, %127, %cst_38 [1, 2] : vector<1x8x128xf32> to vector<1xf32>
    %129 = vector.shape_cast %128 : vector<1xf32> to vector<1x1x1xf32>
    %130 = vector.extract %129[0, 0, 0] : f32 from vector<1x1x1xf32>
    %131 = math.sqrt %130 : f32
    %132 = vector.broadcast %131 : f32 to vector<8x1xf32>
    %133 = arith.mulf %70, %132 : vector<8x1xf32>
    %134 = arith.negf %133 : vector<8x1xf32>
    %135 = math.exp %134 : vector<8x1xf32>
    %cst_39 = arith.constant 1.000000e+00 : f32
    %136 = vector.broadcast %cst_39 : f32 to vector<8x1xf32>
    %137 = arith.addf %136, %135 : vector<8x1xf32>
    %138 = arith.divf %136, %137 : vector<8x1xf32>
    %cst_40 = arith.constant 1.000000e+00 : f32
    %139 = vector.broadcast %cst_40 : f32 to vector<8x1xf32>
    %140 = arith.subf %139, %138 : vector<8x1xf32>
    %141 = arith.subf %48, %108 : vector<8x128xf32>
    %142 = arith.mulf %141, %141 : vector<8x128xf32>
    %143 = vector.shape_cast %142 : vector<8x128xf32> to vector<1x8x128xf32>
    %cst_41 = arith.constant dense<0.000000e+00> : vector<1xf32>
    %144 = vector.multi_reduction <add>, %143, %cst_41 [1, 2] : vector<1x8x128xf32> to vector<1xf32>
    %145 = vector.shape_cast %144 : vector<1xf32> to vector<1x1x1xf32>
    %146 = vector.extract %145[0, 0, 0] : f32 from vector<1x1x1xf32>
    %147 = math.sqrt %146 : f32
    %148 = vector.broadcast %147 : f32 to vector<8x1xf32>
    %149 = arith.mulf %76, %148 : vector<8x1xf32>
    %150 = arith.negf %149 : vector<8x1xf32>
    %151 = math.exp %150 : vector<8x1xf32>
    %cst_42 = arith.constant 1.000000e+00 : f32
    %152 = vector.broadcast %cst_42 : f32 to vector<8x1xf32>
    %153 = arith.addf %152, %151 : vector<8x1xf32>
    %154 = arith.divf %152, %153 : vector<8x1xf32>
    %cst_43 = arith.constant 1.000000e+00 : f32
    %155 = vector.broadcast %cst_43 : f32 to vector<8x1xf32>
    %156 = arith.subf %155, %154 : vector<8x1xf32>
    %157 = vector.broadcast %124 : vector<8x1xf32> to vector<8x128xf32>
    %158 = arith.mulf %157, %24 : vector<8x128xf32>
    %159 = arith.addf %108, %158 : vector<8x128xf32>
    %160 = vector.broadcast %140 : vector<8x1xf32> to vector<8x128xf32>
    %161 = arith.mulf %160, %36 : vector<8x128xf32>
    %162 = arith.addf %159, %161 : vector<8x128xf32>
    %163 = vector.broadcast %156 : vector<8x1xf32> to vector<8x128xf32>
    %164 = arith.mulf %163, %48 : vector<8x128xf32>
    %165 = arith.addf %162, %164 : vector<8x128xf32>
    %166 = arith.truncf %165 : vector<8x128xf32> to vector<8x128xbf16>
    %c4 = arith.constant 4 : index
    %c0_44 = arith.constant 0 : index
    %c0_45 = arith.constant 0 : index
    %167 = vector.load %arg4[%c4, %c0_44, %c0_45] : memref<8x128x128xbf16, #tpu.memory_space<vmem>>, vector<1x128x128xbf16>
    %168 = vector.shape_cast %167 : vector<1x128x128xbf16> to vector<128x128xbf16>
    %cst_46 = arith.constant dense<0.000000e+00> : vector<8x128xf32>
    %169 = tpu.matmul %166, %168, %cst_46 {dimension_numbers = #tpu.dot_dimension_numbers<[1], [0], [0], [1], [0, 0, 1, 1], [], []>} : vector<8x128xbf16>, vector<128x128xbf16>, vector<8x128xf32> -> vector<8x128xf32>
    %170 = vector.extract_strided_slice %3 {offsets = [11, 0], sizes = [1, 128], strides = [1, 1]} : vector<16x128xf32> to vector<1x128xf32>
    %171 = vector.broadcast %170 : vector<1x128xf32> to vector<8x128xf32>
    %172 = arith.addf %169, %171 : vector<8x128xf32>
    %173 = arith.truncf %172 : vector<8x128xf32> to vector<8x128xbf16>
    %cst_47 = arith.constant dense<0.000000e+00> : vector<8x128xf32>
    %174 = tpu.matmul %173, %78, %cst_47 {dimension_numbers = #tpu.dot_dimension_numbers<[1], [0], [0], [1], [0, 0, 1, 1], [], []>} : vector<8x128xbf16>, vector<128x128xbf16>, vector<8x128xf32> -> vector<8x128xf32>
    %175 = vector.broadcast %79 : vector<1x128xf32> to vector<8x128xf32>
    %176 = arith.addf %174, %175 : vector<8x128xf32>
    %177 = arith.truncf %176 : vector<8x128xf32> to vector<8x128xbf16>
    %c0_48 = arith.constant 0 : index
    %c0_49 = arith.constant 0 : index
    %c0_50 = arith.constant 0 : index
    %178 = vector.load %arg4[%c0_48, %c0_49, %c0_50] : memref<8x128x128xbf16, #tpu.memory_space<vmem>>, vector<1x128x128xbf16>
    %179 = vector.shape_cast %178 : vector<1x128x128xbf16> to vector<128x128xbf16>
    %cst_51 = arith.constant dense<0.000000e+00> : vector<8x128xf32>
    %180 = tpu.matmul %177, %179, %cst_51 {dimension_numbers = #tpu.dot_dimension_numbers<[1], [0], [0], [1], [0, 0, 1, 1], [], []>} : vector<8x128xbf16>, vector<128x128xbf16>, vector<8x128xf32> -> vector<8x128xf32>
    %181 = vector.extract_strided_slice %3 {offsets = [0, 0], sizes = [1, 128], strides = [1, 1]} : vector<16x128xf32> to vector<1x128xf32>
    %182 = vector.broadcast %181 : vector<1x128xf32> to vector<8x128xf32>
    %183 = arith.mulf %180, %182 : vector<8x128xf32>
    %184 = vector.extract_strided_slice %3 {offsets = [1, 0], sizes = [1, 128], strides = [1, 1]} : vector<16x128xf32> to vector<1x128xf32>
    %185 = vector.broadcast %184 : vector<1x128xf32> to vector<8x128xf32>
    %186 = arith.addf %183, %185 : vector<8x128xf32>
    %cst_52 = arith.constant 0.000000e+00 : f32
    %187 = vector.broadcast %cst_52 : f32 to vector<8x128xf32>
    %188 = arith.maximumf %186, %187 : vector<8x128xf32>
    %189 = arith.truncf %188 : vector<8x128xf32> to vector<8x128xbf16>
    %c1_53 = arith.constant 1 : index
    %c0_54 = arith.constant 0 : index
    %c0_55 = arith.constant 0 : index
    %190 = vector.load %arg4[%c1_53, %c0_54, %c0_55] : memref<8x128x128xbf16, #tpu.memory_space<vmem>>, vector<1x128x128xbf16>
    %191 = vector.shape_cast %190 : vector<1x128x128xbf16> to vector<128x128xbf16>
    %cst_56 = arith.constant dense<0.000000e+00> : vector<8x128xf32>
    %192 = tpu.matmul %189, %191, %cst_56 {dimension_numbers = #tpu.dot_dimension_numbers<[1], [0], [0], [1], [0, 0, 1, 1], [], []>} : vector<8x128xbf16>, vector<128x128xbf16>, vector<8x128xf32> -> vector<8x128xf32>
    %193 = vector.extract_strided_slice %3 {offsets = [2, 0], sizes = [1, 128], strides = [1, 1]} : vector<16x128xf32> to vector<1x128xf32>
    %194 = vector.broadcast %193 : vector<1x128xf32> to vector<8x128xf32>
    %195 = arith.mulf %192, %194 : vector<8x128xf32>
    %196 = vector.extract_strided_slice %3 {offsets = [3, 0], sizes = [1, 128], strides = [1, 1]} : vector<16x128xf32> to vector<1x128xf32>
    %197 = vector.broadcast %196 : vector<1x128xf32> to vector<8x128xf32>
    %198 = arith.addf %195, %197 : vector<8x128xf32>
    %cst_57 = arith.constant 0.000000e+00 : f32
    %199 = vector.broadcast %cst_57 : f32 to vector<8x128xf32>
    %200 = arith.maximumf %198, %199 : vector<8x128xf32>
    %201 = arith.addf %176, %200 : vector<8x128xf32>
    %202 = arith.truncf %201 : vector<8x128xf32> to vector<8x128xbf16>
    %c7 = arith.constant 7 : index
    %c0_58 = arith.constant 0 : index
    %c0_59 = arith.constant 0 : index
    %203 = vector.load %arg4[%c7, %c0_58, %c0_59] : memref<8x128x128xbf16, #tpu.memory_space<vmem>>, vector<1x128x128xbf16>
    %204 = vector.shape_cast %203 : vector<1x128x128xbf16> to vector<128x128xbf16>
    %cst_60 = arith.constant dense<0.000000e+00> : vector<8x128xf32>
    %205 = tpu.matmul %202, %204, %cst_60 {dimension_numbers = #tpu.dot_dimension_numbers<[1], [0], [0], [1], [0, 0, 1, 1], [], []>} : vector<8x128xbf16>, vector<128x128xbf16>, vector<8x128xf32> -> vector<8x128xf32>
    %206 = vector.extract_strided_slice %3 {offsets = [13, 0], sizes = [1, 128], strides = [1, 1]} : vector<16x128xf32> to vector<1x128xf32>
    %207 = vector.broadcast %206 : vector<1x128xf32> to vector<8x128xf32>
    %208 = arith.addf %205, %207 : vector<8x128xf32>
    %209 = arith.addf %172, %56 : vector<8x128xf32>
    %210 = arith.addf %209, %208 : vector<8x128xf32>
    %211 = vector.extract_strided_slice %3 {offsets = [14, 0], sizes = [1, 128], strides = [1, 1]} : vector<16x128xf32> to vector<1x128xf32>
    %212 = vector.broadcast %211 : vector<1x128xf32> to vector<8x128xf32>
    %213 = arith.mulf %210, %212 : vector<8x128xf32>
    %c0_61 = arith.constant 0 : index
    %c0_62 = arith.constant 0 : index
    %214 = vector.load %arg6[%c0_61, %c0_62] : memref<8x128xf32, #tpu.memory_space<vmem>>, vector<8x128xf32>
    tpu.vector_store %arg6[%c0_61, %c0_62], %213 {strides = array<i32>} : memref<8x128xf32, #tpu.memory_space<vmem>>, vector<8x128xf32>,
    return
  }
  func.func @transform_0(%arg0: i32) -> (i32, i32) {
    %c0_i32 = arith.constant 0 : i32
    %c0_i32_0 = arith.constant 0 : i32
    %c0_i32_1 = arith.constant 0 : i32
    return %c0_i32, %c0_i32_0 : i32, i32
  }
  func.func @transform_1(%arg0: i32) -> (i32, i32) {
    %c0_i32 = arith.constant 0 : i32
    %c0_i32_0 = arith.constant 0 : i32
    %c0_i32_1 = arith.constant 0 : i32
    return %c0_i32, %c0_i32_0 : i32, i32
  }
  func.func @transform_2(%arg0: i32) -> (i32, i32) {
    %c0_i32 = arith.constant 0 : i32
    %c0_i32_0 = arith.constant 0 : i32
    %c0_i32_1 = arith.constant 0 : i32
    return %c0_i32, %c0_i32_0 : i32, i32
  }
  func.func @transform_3(%arg0: i32) -> (i32, i32, i32) {
    %c0_i32 = arith.constant 0 : i32
    %c0_i32_0 = arith.constant 0 : i32
    %c0_i32_1 = arith.constant 0 : i32
    %c0_i32_2 = arith.constant 0 : i32
    return %c0_i32, %c0_i32_0, %c0_i32_1 : i32, i32, i32
  }
  func.func @transform_4(%arg0: i32) -> (i32, i32) {
    %c0_i32 = arith.constant 0 : i32
    %c0_i32_0 = arith.constant 0 : i32
    %c0_i32_1 = arith.constant 0 : i32
    return %c0_i32, %c0_i32_0 : i32, i32
  }
  func.func @transform_5(%arg0: i32) -> (i32, i32) {
    %c0_i32 = arith.constant 0 : i32
    %c0_i32_0 = arith.constant 0 : i32
    %c0_i32_1 = arith.constant 0 : i32
    return %c0_i32, %c0_i32_0 : i32, i32
  }
}

</mosaic_0001>

<bundles_post_ra>
// kernel: linear_model_forward.1
= control target key start
LH: loop header
LB: loop body
LE: loop exit
PB: predicated region body
PF: predicated region fallthrough
CT: control target
= control target key end

     0   :  { %10 = vsyncpa [#allocation3], 0  ;;  %s2662_s0 = inlined_call_operand.hbm [shape: f32[8,28], index: 0, kind: input, shape index: {}]   ;;  %s2663_s1 = inlined_call_operand.hbm [shape: bf16[28,640], index: 1, kind: input, shape index: {}]   ;;  %s2664_s2 = inlined_call_operand.vmem [shape: f32[2,640], index: 2, kind: input, shape index: {}]   ;;  %s2665_s3 = inlined_call_operand.hbm [shape: bf16[8,128,128], index: 3, kind: input, shape index: {}]   ;;  %s2666_s4 = inlined_call_operand.hbm [shape: f32[16,128], index: 4, kind: input, shape index: {}]   ;;  %s2667_s5 = inlined_call_operand.vmem [shape: f32[8,128], index: 5, kind: output, shape index: {}]  }
   0x1   :  { %11 = vsyncpa [#allocation5], 0 }
   0x2   :  { %12 = vsyncpa [#allocation8], 0  ;;  %s2206_s18 = smov [#allocation4]   ;;  %s2112_s22 = scalar_lea.hbm %s2663_s1, 1280 }
   0x3   :  { %s28_s19 = sshll.u32 %s2206_s18, 4  ;;  %p2113_p0 = scmp.ne.s32.totalorder %s2663_s1, %s2112_s22  ;;  %s29_s19 = int_to_ptr.vmem [resolvable:$true] %s28_s19 }
   0x4   :  { %p2116_p1 = scmp.lt.u32.totalorder %s2112_s22, %s2663_s1 }
   0x6   :  { %p2118_p2 = pnand %p2116_p1, %p2113_p0 }
   0x8   :  { %2121 = shalt.err (!%p2118_p2)
}
   0x9   :  { %s2122_s27 = scalar_lea.vmem %s29_s19, 1280  ;;  %p2127_p4 = scmp.lt.s32.totalorder %s29_s19, %s29_s19 }
   0xa   :  { %p2123_p3 = scmp.ne.s32.totalorder %s29_s19, %s2122_s27  ;;  %p2128_p5 = scmp.lt.s32.totalorder %s2122_s27, %s2122_s27 }
   0xc   :  { %p2129_p6 = por %p2128_p5, %p2127_p4 }
   0xe   :  { %p2130_p7 = pnand %p2129_p6, %p2123_p3 }
  0x10   :  { %2133 = shalt.err (!%p2130_p7)
}
  0x11   :  { %s2207_s28 = smov 320   ;;  %s2208_s29 = smov 20  }
  0x12   :  { %34 = dma.hbm_to_vmem [thread:$0]  %s2663_s1, 1280, %s29_s19, [#allocation5], %s2207_s28, %s2207_s28, %s2208_s29  }
  0x13   :  { %s2209_s7 = smov [#allocation2]   ;;  %s2210_s9 = smov [#allocation6]  }
  0x14   :  { %s19_s8 = sshll.u32 %s2209_s7, 4  ;;  %s42_s10 = sshll.u32 %s2210_s9, 4  ;;  %s20_s8 = int_to_ptr.vmem [resolvable:$true] %s19_s8  ;;  %s43_s10 = int_to_ptr.vmem [resolvable:$true] %s42_s10 }
  0x15   :  { %s2134_s13 = scalar_lea.hbm %s2662_s0, 128 }
  0x16   :  { %p2135_p8 = scmp.ne.s32.totalorder %s2662_s0, %s2134_s13  ;;  %p2138_p9 = scmp.lt.u32.totalorder %s2134_s13, %s2662_s0 }
  0x18   :  { %p2140_p10 = pnand %p2138_p9, %p2135_p8 }
  0x1a   :  { %2143 = shalt.err (!%p2140_p10)
}
  0x1b   :  { %s2144_s1 = scalar_lea.vmem %s20_s8, 128  ;;  %p2149_p12 = scmp.lt.s32.totalorder %s20_s8, %s20_s8 }
  0x1c   :  { %p2145_p11 = scmp.ne.s32.totalorder %s20_s8, %s2144_s1  ;;  %p2150_p13 = scmp.lt.s32.totalorder %s2144_s1, %s2144_s1 }
  0x1e   :  { %p2151_p0 = por %p2150_p13, %p2149_p12 }
  0x20   :  { %p2152_p1 = pnand %p2151_p0, %p2145_p11 }
  0x22   :  { %2155 = shalt.err (!%p2152_p1)
}
  0x23   :  { %22 = dma.hbm_to_vmem [thread:$0]  %s2662_s0, 128, %s20_s8, [#allocation3]  }
  0x24   :  { %s2156_s22 = scalar_lea.hbm %s2665_s3, 8192 }
  0x25   :  { %p2157_p2 = scmp.ne.s32.totalorder %s2665_s3, %s2156_s22  ;;  %p2160_p3 = scmp.lt.u32.totalorder %s2156_s22, %s2665_s3 }
  0x27   :  { %p2162_p4 = pnand %p2160_p3, %p2157_p2 }
  0x29   :  { %2165 = shalt.err (!%p2162_p4)
}
  0x2a   :  { %s2166_s27 = scalar_lea.vmem %s43_s10, 8192  ;;  %p2171_p6 = scmp.lt.s32.totalorder %s43_s10, %s43_s10 }
  0x2b   :  { %p2167_p5 = scmp.ne.s32.totalorder %s43_s10, %s2166_s27  ;;  %p2172_p7 = scmp.lt.s32.totalorder %s2166_s27, %s2166_s27 }
  0x2d   :  { %p2173_p8 = por %p2172_p7, %p2171_p6 }
  0x2f   :  { %p2174_p9 = pnand %p2173_p8, %p2167_p5 }
  0x31   :  { %2177 = shalt.err (!%p2174_p9)
}
  0x32   :  { %s2211_s0 = smov 64   ;;  %s2212_s28 = smov 4  }
  0x33   :  { %48 = dma.hbm_to_vmem [thread:$0]  %s2665_s3, 8192, %s43_s10, [#allocation5], %s2211_s0, %s2211_s0, %s2212_s28  }
  0x34   :  { %s2213_s6 = smov [#allocation7]   ;;  %s2178_s11 = scalar_lea.hbm %s2666_s4, 256 }
  0x35   :  { %s54_s7 = sshll.u32 %s2213_s6, 4  ;;  %p2179_p10 = scmp.ne.s32.totalorder %s2666_s4, %s2178_s11  ;;  %s55_s7 = int_to_ptr.vmem [resolvable:$true] %s54_s7 }
  0x36   :  { %p2182_p11 = scmp.lt.u32.totalorder %s2178_s11, %s2666_s4 }
  0x38   :  { %p2184_p12 = pnand %p2182_p11, %p2179_p10 }
  0x3a   :  { %2187 = shalt.err (!%p2184_p12)
}
  0x3b   :  { %s2188_s16 = scalar_lea.vmem %s55_s7, 256  ;;  %p2193_p0 = scmp.lt.s32.totalorder %s55_s7, %s55_s7 }
  0x3c   :  { %p2189_p13 = scmp.ne.s32.totalorder %s55_s7, %s2188_s16  ;;  %p2194_p1 = scmp.lt.s32.totalorder %s2188_s16, %s2188_s16 }
  0x3e   :  { %p2195_p2 = por %p2194_p1, %p2193_p0 }
  0x40   :  { %p2196_p3 = pnand %p2195_p2, %p2189_p13 }
  0x42   :  { %2199 = shalt.err (!%p2196_p3)
}
  0x43   :  { %s2214_s3 = smov 128   ;;  %s2215_s10 = smov 8  }
  0x44   :  { %60 = dma.hbm_to_vmem [thread:$0]  %s2666_s4, 256, %s55_s7, [#allocation8], %s2214_s3, %s2214_s3, %s2215_s10  }
  0x45   :  { %2200 = dma.done.wait [#allocation3], 128  }
  0x46   :  { %2201 = vsyncadd [#allocation3], 4294967168 }
  0x47   :  { %2202 = dma.done.wait [#allocation5], 9472  }
  0x48   :  { %2203 = vsyncadd [#allocation5], 4294957824 }
  0x49   :  { %2204 = dma.done.wait [#allocation8], 256  }
  0x4a   :  { %2205 = vsyncadd [#allocation8], 4294967040  ;;  %v2216_v0 = vmov 0   ;;  %v2217_v1 = vmov 0.0   ;;  %vm2218_vm0 = vmmov 0   ;;  %vm143_vm1 = vcmask 1045504  }
  0x4b   :  { %191 = vmatprep.mubr.bf16.mxu0 %v2216_v0  ;;  %1768 = vmatprep.subr.bf16.mxu1 %v2217_v1  ;;  %v2015_v2 = vld [vmem:[#allocation4 + $0x4] ss:$20 sps:$4 sm:$0xff]   ;;  %v2017_v3 = vld [vmem:[#allocation4] ss:$20 sps:$4 sm:$0xff]   ;;  %vm139_vm2 = vcmask 228352   ;;  %v2324_v20 = vld [vmem:[#allocation6 + $0x18] sm:$0xff]   ;;  %v283_v31 = vlaneseq }
  0x4c   :  { %1784 = vmatprep.mubr.msk.bf16.mxu1 %vm2218_vm0, %v2217_v1  ;;  %2013 = vset.pattern.permute.xlu0 %v2216_v0  ;;  %v2018_v4 = vld [vmem:[#allocation4 + $0x2c] ss:$20 sps:$4 sm:$0x3f]   ;;  %v2020_v5 = vld [vmem:[#allocation4 + $0x28] ss:$20 sps:$4 sm:$0x3f]  }
  0x4d   :  { %2014 = vset.pattern.permute.xlu1 %v2216_v0  ;;  %159 = vmatprep.subr.bf16.mxu0 %v2015_v2  ;;  %v74_v6 = vld [vmem:[#allocation2] sm:$0xff]  ;;  %v145_v7 = vsel %vm143_vm1, %v2020_v5, 0  ;;  %v2023_v8 = vld [vmem:[#allocation4 + $0xc] ss:$20 sps:$4 sm:$0xff]   ;;  %v2029_v9 = vld [vmem:[#allocation6] sm:$0xff]   ;;  %v2368_v32 = vshrl.u32 %v283_v31, 7 }
  0x4e   :  { %160 = vmatpush1.bf16.msra.mxu0 %v2017_v3  ;;  %v75_v10 = vpack.c.bf16 %v74_v6, %v74_v6  ;;  %v2024_v11 = vld [vmem:[#allocation4 + $0x34] ss:$20 sps:$4 sm:$0x3f]   ;;  %v2026_v12 = vld [vmem:[#allocation4 + $0x30] ss:$20 sps:$4 sm:$0x3f]   ;;  %1769 = vmatpush3.bf16.msra.mxu1 %v2029_v9 }
  0x4f   :  { %1586 = vmatprep.subr.msk.bf16.mxu0 %vm143_vm1, %v2018_v4  ;;  %v2021_v13 = vld [vmem:[#allocation4 + $0x8] ss:$20 sps:$4 sm:$0xff]   ;;  %v2028_v14 = vld [vmem:[#allocation4 + $0x38] ss:$20 sps:$4 sm:$0x3f]   ;;  %1770 = vmatprep.subr.bf16.mxu1 %v2217_v1  ;;  %v151_v15 = vsel %vm143_vm1, %v2026_v12, 0 }
  0x50   :  { %v157_v16 = vsel %vm143_vm1, %v2028_v14, 0  ;;  %v2027_v17 = vld [vmem:[#allocation4 + $0x10] ss:$20 sps:$4 sm:$0xff]   ;;  %v2316_v18 = vld [vmem:[#allocation6 + $0x8] sm:$0xff]   ;;  %v2340_v24 = vld [vmem:[#allocation6 + $0x38] sm:$0xff]   ;;  %v2371_v33 = vsub.s32 0, %v2368_v32 }
  0x51   :  { %v2320_v19 = vld [vmem:[#allocation6 + $0x10] sm:$0xff]   ;;  %v2328_v21 = vld [vmem:[#allocation6 + $0x20] sm:$0xff]   ;;  %v2332_v22 = vld [vmem:[#allocation6 + $0x28] sm:$0xff]   ;;  %v2377_v35 = vsub.s32 2, %v2368_v32  ;;  %v2380_v36 = vsub.s32 1, %v2368_v32  ;;  %v2383_v37 = vsub.s32 3, %v2368_v32 }
  0x52   :  { %162 = vmatpush1.bf16.msra.mxu0 %v145_v7  ;;  %1771 = vmatpush3.bf16.msra.mxu1 %v2316_v18  ;;  %v2336_v23 = vld [vmem:[#allocation6 + $0x30] sm:$0xff]   ;;  %v2344_v25 = vld [vmem:[#allocation6 + $0x40] sm:$0xff]   ;;  %v2347_v26 = vld [vmem:[#allocation6 + $0x48] sm:$0xff]   ;;  %v2391_v43 = vsub.s32 4, %v2368_v32  ;;  %v2395_v45 = vsub.s32 6, %v2368_v32  ;;  %v2399_v47 = vsub.s32 5, %v2368_v32 }
  0x53   :  { %200 = vmatprep.subr.bf16.mxu0 %v2023_v8  ;;  %1772 = vmatprep.subr.bf16.mxu1 %v2217_v1  ;;  %v2351_v27 = vld [vmem:[#allocation6 + $0x50] sm:$0xff]   ;;  %v2355_v28 = vld [vmem:[#allocation6 + $0x58] sm:$0xff]   ;;  %v2359_v29 = vld [vmem:[#allocation6 + $0x60] sm:$0xff]   ;;  %v347_v50 = vsub.s32 7, %v2368_v32 }
  0x54   :  { %v2363_v30 = vld [vmem:[#allocation6 + $0x68] sm:$0xff]   ;;  %v77_v3 = vld [vmem:[%s2664_s2 + $0x8] sm:$0x3] }
  0x55   :  { %1587 = vmatmul.mubr.msk.bf16.vlgmr.msra.gmra.mrb[0].mxu0 %vm139_vm2, %v75_v10  ;;  %v76_v34 = vld [vmem:[%s2664_s2] sm:$0xff] }
  0x56   :  { %201 = vmatpush1.bf16.msra.mxu0 %v2021_v13  ;;  %232 = vmatprep.mubr.bf16.mxu0 %v2216_v0  ;;  %v286_v38 = vrot.slane %v76_v34, %v2371_v33  ;;  %v290_v39 = vrot.slane %v76_v34, %v2377_v35  ;;  %v336_v40 = vrot.slane %v76_v34, %v2380_v36 }
  0x57   :  { %1588 = vmatprep.subr.msk.bf16.mxu0 %vm143_vm1, %v2024_v11  ;;  %1773 = vmatpush3.bf16.msra.mxu1 %v2320_v19  ;;  %v340_v41 = vrot.slane %v76_v34, %v2383_v37  ;;  %v294_v53 = vrot.slane %v76_v34, %v2391_v43  ;;  %v298_v56 = vrot.slane %v76_v34, %v2395_v45 }
  0x58   :  { %1774 = vmatprep.subr.bf16.mxu1 %v2217_v1  ;;  %v311_v42 = vrot.slane %v286_v38, %v2371_v33  ;;  %v315_v44 = vrot.slane %v290_v39, %v2371_v33  ;;  %v361_v46 = vrot.slane %v336_v40, %v2380_v36  ;;  %v344_v59 = vrot.slane %v76_v34, %v2399_v47 }
  0x59   :  { %v365_v49 = vrot.slane %v340_v41, %v2380_v36  ;;  %v348_v61 = vrot.slane %v76_v34, %v347_v50  ;;  %v319_v63 = vrot.slane %v294_v53, %v2371_v33  ;;  %v323_v2 = vrot.slane %v298_v56, %v2371_v33  ;;  %v2429_v56 = vld [vmem:[#allocation6 + $0x78] sm:$0xff]  }
  0x5a   :  { %203 = vmatpush1.bf16.msra.mxu0 %v151_v15  ;;  %v369_v4 = vrot.slane %v344_v59, %v2380_v36  ;;  %v352_v15 = vrot.slane %v77_v3, %v2380_v36  ;;  %v2047_v59 = vld [vmem:[#allocation6 + $0x150] sm:$0xff]  }
  0x5b   :  { %1760 = vmatprep.subr.bf16.mxu0 %v2217_v1  ;;  %1775 = vmatpush3.bf16.msra.mxu1 %v2324_v20  ;;  %v373_v7 = vrot.slane %v348_v61, %v2380_v36  ;;  %v2049_v61 = vld [vmem:[#allocation6 + $0x160] sm:$0xff]  }
  0x5c   :  { %1776 = vmatprep.subr.bf16.mxu1 %v2217_v1  ;;  %v377_v39 = vrot.slane %v352_v15, %v2380_v36  ;;  %v2466_v15 = vld [vmem:[#allocation6 + $0x190] sm:$0xff]  }
  0x5d   :  { %1589 = vmatmul.mubr.msk.bf16.vlgmr.msra.gmra.mrb[4].mxu0 %vm139_vm2, %v75_v10 }
  0x5e   :  { %1761 = vmatpush3.bf16.msra.mxu0 %v2027_v17  ;;  %1764 = vmatprep.mubr.msk.bf16.mxu0 %vm2218_vm0, %v2217_v1 }
  0x5f   :  { %1762 = vmatprep.subr.bf16.mxu0 %v2217_v1  ;;  %1777 = vmatpush3.bf16.msra.mxu1 %v2328_v21 }
  0x60   :  { %1778 = vmatprep.subr.bf16.mxu1 %v2217_v1 }
  0x62   :  { %1763 = vmatpush3.bf16.msra.mxu0 %v157_v16 }
  0x63   :  { %1788 = vmatprep.subr.bf16.mxu0 %v2217_v1  ;;  %1779 = vmatpush3.bf16.msra.mxu1 %v2332_v22 }
  0x64   :  { %1780 = vmatprep.subr.bf16.mxu1 %v2217_v1 }
  0x65   :  { %1765 = vmatmul.mubr.msk.bf16.vlgmr.msra.gmra.mrb[8].mxu0 %vm139_vm2, %v75_v10  ;;  %v302_v10 = vrot.slane %v77_v3, %v2371_v33 }
  0x66   :  { %1804 = vmatprep.mubr.msk.bf16.mxu0 %vm2218_vm0, %v2217_v1  ;;  %1789 = vmatpush3.bf16.msra.mxu0 %v2344_v25 }
  0x67   :  { %1781 = vmatpush3.bf16.msra.mxu1 %v2336_v23  ;;  %1790 = vmatprep.subr.bf16.mxu0 %v2217_v1  ;;  %v327_v31 = vrot.slane %v302_v10, %v2371_v33  ;;  %v2050_v10 = vld [vmem:[#allocation6 + $0x168] sm:$0xff]  }
  0x68   :  { %1782 = vmatprep.subr.bf16.mxu1 %v2217_v1 }
  0x6a   :  { %1791 = vmatpush3.bf16.msra.mxu0 %v2347_v26 }
  0x6b   :  { %1783 = vmatpush3.bf16.msra.mxu1 %v2340_v24  ;;  %1792 = vmatprep.subr.bf16.mxu0 %v2217_v1 }
  0x6c   :  { %1808 = vmatprep.subr.bf16.mxu1 %v2217_v1 }
  0x6e   :  { %1793 = vmatpush3.bf16.msra.mxu0 %v2351_v27 }
  0x6f   :  { %1794 = vmatprep.subr.bf16.mxu0 %v2217_v1 }
  0x72   :  { %1795 = vmatpush3.bf16.msra.mxu0 %v2355_v28 }
  0x73   :  { %1796 = vmatprep.subr.bf16.mxu0 %v2217_v1 }
  0x76   :  { %1797 = vmatpush3.bf16.msra.mxu0 %v2359_v29 }
  0x77   :  { %1798 = vmatprep.subr.bf16.mxu0 %v2217_v1 }
  0x7a   :  { %1799 = vmatpush3.bf16.msra.mxu0 %v2363_v30 }
  0x7b   :  { %1800 = vmatprep.subr.bf16.mxu0 %v2217_v1 }
 0x128   :  { %v193_v48 = vpop.f32.mrb[0].mxu0 }
 0x129   :  { %v328_v51 = vmul.f32 %v311_v42, %v193_v48  ;;  %v195_v52 = vpop.f32.mrb[1].mxu0 }
 0x12a   :  { %v329_v54 = vmul.f32 %v315_v44, %v195_v52  ;;  %v197_v55 = vpop.f32.mrb[2].mxu0 }
 0x12b   :  { %v378_v57 = vadd.f32 %v361_v46, %v328_v51  ;;  %v198_v58 = vpop.f32.mrb[3].mxu0  ;;  %v2425_v55 = vld [vmem:[#allocation6 + $0x70] sm:$0xff]  }
 0x12c   :  { %v379_v60 = vadd.f32 %v365_v49, %v329_v54  ;;  %1801 = vmatpush3.bf16.msra.mxu0 %v2425_v55  ;;  %v2046_v58 = vld [vmem:[#allocation6 + $0x148] sm:$0xff]  }
 0x12d   :  { %v383_v62 = vmax.f32 %v378_v57, 0.0  ;;  %1802 = vmatprep.subr.bf16.mxu0 %v2217_v1  ;;  %v2045_v57 = vld [vmem:[#allocation6 + $0x140] sm:$0xff]  }
 0x12e   :  { %v384_v0 = vmax.f32 %v379_v60, 0.0  ;;  %v2048_v60 = vld [vmem:[#allocation6 + $0x158] sm:$0xff]  }
 0x130   :  { %v388_v5 = vadd.f32 %v384_v0, %v383_v62  ;;  %v234_v6 = vpop.f32.mrb[4].mxu0  ;;  %1803 = vmatpush3.bf16.msra.mxu0 %v2429_v56  ;;  %v2438_v62 = vld [vmem:[#allocation7] sm:$0xff] }
 0x131   :  { %v330_v8 = vmul.f32 %v319_v63, %v234_v6  ;;  %v236_v9 = vpop.f32.mrb[5].mxu0  ;;  %1828 = vmatprep.subr.bf16.mxu0 %v2217_v1  ;;  %v2442_v63 = vrot.slane %v2438_v62, %v2371_v33  ;;  %v2446_v0 = vrot.slane %v2438_v62, %v2380_v36 }
 0x132   :  { %v331_v11 = vmul.f32 %v323_v2, %v236_v9  ;;  %v238_v12 = vpop.f32.mrb[6].mxu0 }
 0x133   :  { %v380_v13 = vadd.f32 %v369_v4, %v330_v8  ;;  %v239_v14 = vpop.f32.mrb[7].mxu0  ;;  %v2052_v12 = vld [vmem:[#allocation6 + $0x178] sm:$0xff]  }
 0x134   :  { %v381_v16 = vadd.f32 %v373_v7, %v331_v11  ;;  %v2051_v11 = vld [vmem:[#allocation6 + $0x170] sm:$0xff]   ;;  %v2462_v14 = vld [vmem:[#allocation6 + $0x188] sm:$0xff]  }
 0x135   :  { %v385_v17 = vmax.f32 %v380_v13, 0.0  ;;  %v2459_v13 = vld [vmem:[#allocation6 + $0x180] sm:$0xff]  }
 0x136   :  { %v386_v34 = vmax.f32 %v381_v16, 0.0  ;;  %v2470_v16 = vld [vmem:[#allocation6 + $0x198] sm:$0xff]  }
 0x137   :  { %v389_v38 = vadd.f32 %v388_v5, %v385_v17  ;;  %v2474_v17 = vld [vmem:[#allocation6 + $0x1a0] sm:$0xff]  }
 0x138   :  { %v275_v40 = vpop.f32.mrb[8].mxu0 }
 0x139   :  { %v390_v41 = vadd.f32 %v389_v38, %v386_v34  ;;  %v332_v42 = vmul.f32 %v327_v31, %v275_v40  ;;  %v1766_v44 = vpop.f32.mrb[9].mxu0  ;;  %v2478_v31 = vld [vmem:[#allocation6 + $0x1a8] sm:$0xff]   ;;  %v2482_v34 = vld [vmem:[#allocation6 + $0x1b0] sm:$0xff]   ;;  %v2489_v38 = vrot.slane %v2438_v62, %v2377_v35 }
 0x13a   :  { %v278_v46 = vpop.f32.mrb[10].mxu0 }
 0x13b   :  { %v382_v48 = vadd.f32 %v377_v39, %v332_v42  ;;  %v1767_v49 = vpop.f32.mrb[11].mxu0  ;;  %v2493_v39 = vrot.slane %v2438_v62, %v2383_v37 }
 0x13d   :  { %v387_v51 = vmax.f32 %v382_v48, 0.0 }
 0x13f   :  { %v391_v52 = vadd.f32 %v390_v41, %v387_v51 }
 0x141   :  { %v2419_v53 = vmul.f32 0.2, %v391_v52 }
 0x143   :  { %v394_v54 = vpack.c.bf16 %v2419_v53, %v2419_v53 }
 0x145   :  { %1785 = vmatmul.mubr.bf16.vlgmr.msra.gmra.mrb[0].mxu1 %v394_v54  ;;  %v2503_v54 = vld [vmem:[#allocation6 + $0x1b8] sm:$0xff]  }
 0x146   :  { %1824 = vmatprep.mubr.msk.bf16.mxu1 %vm2218_vm0, %v2217_v1  ;;  %1809 = vmatpush3.bf16.msra.mxu1 %v2045_v57  ;;  %v2061_v57 = vld [vmem:[#allocation6 + $0x80] sm:$0xff]  }
 0x147   :  { %1810 = vmatprep.subr.bf16.mxu1 %v2217_v1 }
 0x14a   :  { %1811 = vmatpush3.bf16.msra.mxu1 %v2046_v58  ;;  %v2062_v58 = vld [vmem:[#allocation6 + $0x88] sm:$0xff]  }
 0x14b   :  { %1812 = vmatprep.subr.bf16.mxu1 %v2217_v1 }
 0x14e   :  { %1813 = vmatpush3.bf16.msra.mxu1 %v2047_v59  ;;  %v2063_v59 = vld [vmem:[#allocation6 + $0x90] sm:$0xff]  }
 0x14f   :  { %1814 = vmatprep.subr.bf16.mxu1 %v2217_v1 }
 0x152   :  { %1815 = vmatpush3.bf16.msra.mxu1 %v2048_v60  ;;  %v2064_v60 = vld [vmem:[#allocation6 + $0x98] sm:$0xff]  }
 0x153   :  { %1816 = vmatprep.subr.bf16.mxu1 %v2217_v1 }
 0x156   :  { %1817 = vmatpush3.bf16.msra.mxu1 %v2049_v61  ;;  %v2065_v61 = vld [vmem:[#allocation6 + $0xa0] sm:$0xff]  }
 0x157   :  { %1818 = vmatprep.subr.bf16.mxu1 %v2217_v1 }
 0x15a   :  { %1819 = vmatpush3.bf16.msra.mxu1 %v2050_v10 }
 0x15b   :  { %1820 = vmatprep.subr.bf16.mxu1 %v2217_v1 }
 0x15e   :  { %1821 = vmatpush3.bf16.msra.mxu1 %v2051_v11 }
 0x15f   :  { %1822 = vmatprep.subr.bf16.mxu1 %v2217_v1 }
 0x162   :  { %1823 = vmatpush3.bf16.msra.mxu1 %v2052_v12 }
 0x163   :  { %1848 = vmatprep.subr.bf16.mxu1 %v2217_v1 }
 0x218   :  { %v493_v2 = vpop.f32.mrb[0].mxu1 }
 0x219   :  { %v503_v3 = vmul.f32 %v2442_v63, %v493_v2  ;;  %v1786_v4 = vpop.f32.mrb[1].mxu1  ;;  %v2066_v2 = vld [vmem:[#allocation6 + $0xa8] sm:$0xff]  }
 0x21a   :  { %v496_v5 = vpop.f32.mrb[2].mxu1  ;;  %v2514_v4 = vld [vmem:[#allocation7 + $0x8] sm:$0xff] }
 0x21b   :  { %v508_v6 = vadd.f32 %v2446_v0, %v503_v3  ;;  %v1787_v7 = vpop.f32.mrb[3].mxu1  ;;  %v2067_v3 = vld [vmem:[#allocation6 + $0xb0] sm:$0xff]   ;;  %v649_v5 = vrot.slane %v2514_v4, %v2391_v43  ;;  %v741_v32 = vrot.slane %v2514_v4, %v2380_v36 }
 0x21d   :  { %v2450_v8 = vmax.f32 %v508_v6, 0.0 }
 0x21f   :  { %v510_v9 = vpack.c.bf16 %v2450_v8, %v2450_v8 }
 0x221   :  { %1805 = vmatmul.mubr.bf16.vlgmr.msra.gmra.mrb[12].mxu0 %v510_v9 }
 0x222   :  { %1844 = vmatprep.mubr.msk.bf16.mxu0 %vm2218_vm0, %v2217_v1  ;;  %1829 = vmatpush3.bf16.msra.mxu0 %v2459_v13 }
 0x223   :  { %1830 = vmatprep.subr.bf16.mxu0 %v2217_v1 }
 0x226   :  { %1831 = vmatpush3.bf16.msra.mxu0 %v2462_v14 }
 0x227   :  { %1832 = vmatprep.subr.bf16.mxu0 %v2217_v1 }
 0x22a   :  { %1833 = vmatpush3.bf16.msra.mxu0 %v2466_v15 }
 0x22b   :  { %1834 = vmatprep.subr.bf16.mxu0 %v2217_v1 }
 0x22e   :  { %1835 = vmatpush3.bf16.msra.mxu0 %v2470_v16 }
 0x22f   :  { %1836 = vmatprep.subr.bf16.mxu0 %v2217_v1 }
 0x232   :  { %1837 = vmatpush3.bf16.msra.mxu0 %v2474_v17 }
 0x233   :  { %1838 = vmatprep.subr.bf16.mxu0 %v2217_v1 }
 0x236   :  { %1839 = vmatpush3.bf16.msra.mxu0 %v2478_v31 }
 0x237   :  { %1840 = vmatprep.subr.bf16.mxu0 %v2217_v1 }
 0x23a   :  { %1841 = vmatpush3.bf16.msra.mxu0 %v2482_v34 }
 0x23b   :  { %1842 = vmatprep.subr.bf16.mxu0 %v2217_v1 }
 0x23e   :  { %1843 = vmatpush3.bf16.msra.mxu0 %v2503_v54 }
 0x23f   :  { %1868 = vmatprep.subr.bf16.mxu0 %v2217_v1 }
 0x2f4   :  { %v610_v40 = vpop.f32.mrb[12].mxu0 }
 0x2f5   :  { %v620_v41 = vmul.f32 %v2489_v38, %v610_v40  ;;  %v1806_v42 = vpop.f32.mrb[13].mxu0  ;;  %v2068_v40 = vld [vmem:[#allocation6 + $0xb8] sm:$0xff]  }
 0x2f6   :  { %v613_v44 = vpop.f32.mrb[14].mxu0  ;;  %v2070_v42 = vld [vmem:[#allocation6 + $0xc8] sm:$0xff]  }
 0x2f7   :  { %v625_v46 = vadd.f32 %v2493_v39, %v620_v41  ;;  %v1807_v48 = vpop.f32.mrb[15].mxu0  ;;  %v2069_v41 = vld [vmem:[#allocation6 + $0xc0] sm:$0xff]   ;;  %v2071_v44 = vld [vmem:[#allocation6 + $0xd0] sm:$0xff]  }
 0x2f8   :  { %v2073_v48 = vld [vmem:[#allocation6 + $0xe0] sm:$0xff]  }
 0x2f9   :  { %v2497_v49 = vmax.f32 %v625_v46, 0.0  ;;  %v2072_v46 = vld [vmem:[#allocation6 + $0xd8] sm:$0xff]  }
 0x2fb   :  { %v627_v51 = vadd.f32 %v2497_v49, %v2419_v53 }
 0x2fd   :  { %v628_v52 = vpack.c.bf16 %v627_v51, %v627_v51  ;;  %v2074_v51 = vld [vmem:[#allocation6 + $0xe8] sm:$0xff]  }
 0x2ff   :  { %1825 = vmatmul.mubr.bf16.vlgmr.msra.gmra.mrb[4].mxu1 %v628_v52  ;;  %v2533_v52 = vrot.slane %v2514_v4, %v2371_v33  ;;  %v977_v33 = vrot.slane %v2438_v62, %v2391_v43  ;;  %v1094_v43 = vrot.slane %v2438_v62, %v2395_v45 }
 0x300   :  { %1864 = vmatprep.mubr.msk.bf16.mxu1 %vm2218_vm0, %v2217_v1  ;;  %1849 = vmatpush3.bf16.msra.mxu1 %v2061_v57 }
 0x301   :  { %1850 = vmatprep.subr.bf16.mxu1 %v2217_v1 }
 0x304   :  { %1851 = vmatpush3.bf16.msra.mxu1 %v2062_v58 }
 0x305   :  { %1852 = vmatprep.subr.bf16.mxu1 %v2217_v1 }
 0x308   :  { %1853 = vmatpush3.bf16.msra.mxu1 %v2063_v59 }
 0x309   :  { %1854 = vmatprep.subr.bf16.mxu1 %v2217_v1 }
 0x30c   :  { %1855 = vmatpush3.bf16.msra.mxu1 %v2064_v60 }
 0x30d   :  { %1856 = vmatprep.subr.bf16.mxu1 %v2217_v1 }
 0x310   :  { %1857 = vmatpush3.bf16.msra.mxu1 %v2065_v61 }
 0x311   :  { %1858 = vmatprep.subr.bf16.mxu1 %v2217_v1 }
 0x314   :  { %1859 = vmatpush3.bf16.msra.mxu1 %v2066_v2 }
 0x315   :  { %1860 = vmatprep.subr.bf16.mxu1 %v2217_v1 }
 0x318   :  { %1861 = vmatpush3.bf16.msra.mxu1 %v2067_v3  ;;  %v2075_v3 = vld [vmem:[#allocation6 + $0xf0] sm:$0xff]  }
 0x319   :  { %1862 = vmatprep.subr.bf16.mxu1 %v2217_v1 }
 0x31c   :  { %1863 = vmatpush3.bf16.msra.mxu1 %v2068_v40 }
 0x31d   :  { %1888 = vmatprep.subr.bf16.mxu1 %v2217_v1 }
 0x3d2   :  { %v732_v6 = vpop.f32.mrb[4].mxu1 }
 0x3d3   :  { %v2518_v7 = vadd.f32 %v732_v6, %v649_v5  ;;  %v1826_v9 = vpop.f32.mrb[5].mxu1  ;;  %v2076_v5 = vld [vmem:[#allocation6 + $0xf8] sm:$0xff]   ;;  %v982_v6 = vrot.slane %v2438_v62, %v2399_v47 }
 0x3d4   :  { %v735_v10 = vpop.f32.mrb[6].mxu1 }
 0x3d5   :  { %v775_v11 = vpack.c.bf16 %v2518_v7, %v2518_v7  ;;  %v1827_v12 = vpop.f32.mrb[7].mxu1 }
 0x3d7   :  { %1845 = vmatmul.mubr.bf16.vlgmr.msra.gmra.mrb[16].mxu0 %v775_v11 }
 0x3d8   :  { %1884 = vmatprep.mubr.msk.bf16.mxu0 %vm2218_vm0, %v2217_v1  ;;  %1869 = vmatpush3.bf16.msra.mxu0 %v2069_v41 }
 0x3d9   :  { %1870 = vmatprep.subr.bf16.mxu0 %v2217_v1 }
 0x3dc   :  { %1871 = vmatpush3.bf16.msra.mxu0 %v2070_v42 }
 0x3dd   :  { %1872 = vmatprep.subr.bf16.mxu0 %v2217_v1 }
 0x3e0   :  { %1873 = vmatpush3.bf16.msra.mxu0 %v2071_v44 }
 0x3e1   :  { %1874 = vmatprep.subr.bf16.mxu0 %v2217_v1 }
 0x3e4   :  { %1875 = vmatpush3.bf16.msra.mxu0 %v2072_v46 }
 0x3e5   :  { %1876 = vmatprep.subr.bf16.mxu0 %v2217_v1 }
 0x3e8   :  { %1877 = vmatpush3.bf16.msra.mxu0 %v2073_v48 }
 0x3e9   :  { %1878 = vmatprep.subr.bf16.mxu0 %v2217_v1 }
 0x3ec   :  { %1879 = vmatpush3.bf16.msra.mxu0 %v2074_v51 }
 0x3ed   :  { %1880 = vmatprep.subr.bf16.mxu0 %v2217_v1 }
 0x3f0   :  { %1881 = vmatpush3.bf16.msra.mxu0 %v2075_v3 }
 0x3f1   :  { %1882 = vmatprep.subr.bf16.mxu0 %v2217_v1 }
 0x3f4   :  { %1883 = vmatpush3.bf16.msra.mxu0 %v2076_v5 }
 0x3f5   :  { %1908 = vmatprep.subr.bf16.mxu0 %v2217_v1 }
 0x4aa   :  { %v862_v57 = vpop.f32.mrb[16].mxu0 }
 0x4ab   :  { %v863_v58 = vadd.f32 %v862_v57, %v2533_v52  ;;  %v1846_v59 = vpop.f32.mrb[17].mxu0 }
 0x4ac   :  { %v865_v60 = vpop.f32.mrb[18].mxu0 }
 0x4ad   :  { %v868_v61 = vpack.c.bf16 %v863_v58, %v863_v58  ;;  %v1847_v2 = vpop.f32.mrb[19].mxu0  ;;  %v754_v60 = vmul.f32 %v741_v32, %v2497_v49 }
 0x4af   :  { %1865 = vmatmul.mubr.bf16.vlgmr.msra.gmra.mrb[8].mxu1 %v868_v61  ;;  %v750_v61 = vmul.f32 %v741_v32, %v2450_v8 }
 0x4b0   :  { %1904 = vmatprep.mubr.msk.bf16.mxu1 %vm2218_vm0, %v2217_v1 }
 0x582   :  { %v968_v9 = vpop.f32.mrb[8].mxu1 }
 0x583   :  { %v978_v10 = vmul.f32 %v977_v33, %v968_v9  ;;  %v1866_v11 = vpop.f32.mrb[9].mxu1 }
 0x584   :  { %v971_v12 = vpop.f32.mrb[10].mxu1 }
 0x585   :  { %v983_v40 = vadd.f32 %v982_v6, %v978_v10  ;;  %v1867_v41 = vpop.f32.mrb[11].mxu1 }
 0x587   :  { %v984_v42 = vmax.f32 %v983_v40, 0.0 }
 0x589   :  { %v985_v44 = vpack.c.bf16 %v984_v42, %v984_v42 }
 0x58b   :  { %1885 = vmatmul.mubr.bf16.vlgmr.msra.gmra.mrb[20].mxu0 %v985_v44 }
 0x58c   :  { %1909 = vmatpush3.bf16.msra.mxu0 %v2459_v13  ;;  %1924 = vmatprep.mubr.msk.bf16.mxu0 %vm2218_vm0, %v2217_v1  ;;  %v1099_v13 = vrot.slane %v2438_v62, %v347_v50  ;;  %v742_v62 = vmul.f32 %v741_v32, %v2419_v53 }
 0x58d   :  { %1910 = vmatprep.subr.bf16.mxu0 %v2217_v1 }
 0x590   :  { %1911 = vmatpush3.bf16.msra.mxu0 %v2462_v14 }
 0x591   :  { %1912 = vmatprep.subr.bf16.mxu0 %v2217_v1 }
 0x594   :  { %1913 = vmatpush3.bf16.msra.mxu0 %v2466_v15 }
 0x595   :  { %1914 = vmatprep.subr.bf16.mxu0 %v2217_v1 }
 0x598   :  { %1915 = vmatpush3.bf16.msra.mxu0 %v2470_v16 }
 0x599   :  { %1916 = vmatprep.subr.bf16.mxu0 %v2217_v1 }
 0x59c   :  { %1917 = vmatpush3.bf16.msra.mxu0 %v2474_v17 }
 0x59d   :  { %1918 = vmatprep.subr.bf16.mxu0 %v2217_v1 }
 0x5a0   :  { %1919 = vmatpush3.bf16.msra.mxu0 %v2478_v31 }
 0x5a1   :  { %1920 = vmatprep.subr.bf16.mxu0 %v2217_v1 }
 0x5a4   :  { %1921 = vmatpush3.bf16.msra.mxu0 %v2482_v34 }
 0x5a5   :  { %1922 = vmatprep.subr.bf16.mxu0 %v2217_v1 }
 0x5a8   :  { %1923 = vmatpush3.bf16.msra.mxu0 %v2503_v54 }
 0x5a9   :  { %1948 = vmatprep.subr.bf16.mxu0 %v2217_v1 }
 0x65e   :  { %v1085_v14 = vpop.f32.mrb[20].mxu0 }
 0x65f   :  { %v1095_v15 = vmul.f32 %v1094_v43, %v1085_v14  ;;  %v1886_v16 = vpop.f32.mrb[21].mxu0 }
 0x660   :  { %v1088_v17 = vpop.f32.mrb[22].mxu0 }
 0x661   :  { %v1100_v31 = vadd.f32 %v1099_v13, %v1095_v15  ;;  %v1887_v46 = vpop.f32.mrb[23].mxu0 }
 0x662   :  { %v2582_v46 = vrot.slane %v2514_v4, %v2377_v35 }
 0x663   :  { %v1101_v34 = vmax.f32 %v1100_v31, 0.0 }
 0x665   :  { %v2567_v48 = vadd.f32 %v1101_v34, %v863_v58 }
 0x667   :  { %v1161_v54 = vsub.f32 %v2497_v49, %v2567_v48  ;;  %v1103_v51 = vsub.f32 %v2419_v53, %v2567_v48  ;;  %v1132_v50 = vsub.f32 %v2450_v8, %v2567_v48 }
 0x669   :  { %v1162_v57 = vmul.f32 %v1161_v54, %v1161_v54  ;;  %v1104_v59 = vmul.f32 %v1103_v51, %v1103_v51  ;;  %v1133_v58 = vmul.f32 %v1132_v50, %v1132_v50 }
 0x66b   :  { %1163 = vadd.xlane.f32.xlu1 %v1162_v57  ;;  %1105 = vadd.xlane.f32.xlu0 %v1104_v59 }
 0x66f   :  { %743 = vadd.xlane.f32.xlu1 %v742_v62  ;;  %1134 = vadd.xlane.f32.xlu0 %v1133_v58 }
 0x673   :  { %755 = vadd.xlane.f32.xlu1 %v754_v60  ;;  %751 = vadd.xlane.f32.xlu0 %v750_v61 }
 0x6f8   :  { %v1106_v2 = vpop.xlane.xlu0 %1105  ;;  %v1164_v31 = vpop.xlane.xlu1 %1163 }
 0x6f9   :  { %v1107_v3 = vrot.slane %v1106_v2, 4  ;;  %v1165_v34 = vrot.slane %v1164_v31, 4 }
 0x6fb   :  { %v1108_v5 = vadd.f32 %v1107_v3, %v1106_v2  ;;  %v1166_v57 = vadd.f32 %v1165_v34, %v1164_v31 }
 0x6fc   :  { %v1135_v10 = vpop.xlane.xlu0 %1134  ;;  %v744_v54 = vpop.xlane.xlu1 %743 }
 0x6fd   :  { %v1109_v36 = vrot.slane %v1108_v5, 2  ;;  %v1136_v11 = vrot.slane %v1135_v10, 4  ;;  %v749_v51 = vadd.f32 %v2582_v46, %v744_v54  ;;  %v1167_v58 = vrot.slane %v1166_v57, 2 }
 0x6ff   :  { %v1110_v33 = vadd.f32 %v1109_v36, %v1108_v5  ;;  %v1137_v12 = vadd.f32 %v1136_v11, %v1135_v10  ;;  %v1168_v60 = vadd.f32 %v1167_v58, %v1166_v57  ;;  %v2077_v57 = vld [vmem:[#allocation6 + $0x100] sm:$0xff]   ;;  %v2082_v58 = vld [vmem:[#allocation6 + $0x128] sm:$0xff]  }
 0x700   :  { %1889 = vmatpush3.bf16.msra.mxu1 %v2077_v57  ;;  %v2091_v57 = vld [vmem:[#allocation6 + $0x1f0] sm:$0xff]  }
 0x701   :  { %v1111_v6 = vrot.slane %v1110_v33, 1  ;;  %v1138_v41 = vrot.slane %v1137_v12, 2  ;;  %v1169_v2 = vrot.slane %v1168_v60, 1  ;;  %1890 = vmatprep.subr.bf16.mxu1 %v2217_v1 }
 0x703   :  { %v1112_v9 = vadd.f32 %v1111_v6, %v1110_v33  ;;  %v1139_v42 = vadd.f32 %v1138_v41, %v1137_v12  ;;  %v752_v12 = vpop.xlane.xlu0 %751 }
 0x705   :  { %1988 = vpush %v1112_v9  ;;  %v1140_v43 = vrot.slane %v1139_v42, 1  ;;  %v1170_v9 = vadd.f32 %v1169_v2, %v1168_v60  ;;  %v2083_v60 = vld [vmem:[#allocation6 + $0x130] sm:$0xff]  }
 0x707   :  { %v1141_v17 = vadd.f32 %v1140_v43, %v1139_v42 }
 0x736   :  { %s1989_s2 = spop %1988 }
 0x737   :  { %v1114_v40 = vstv %s1989_s2 }
 0x738   :  { %2093 = vrsqrt.f32 %v1114_v40  ;;  %vm1117_vm3 = vcmp.eq.f32.partialorder %v1114_v40, inf  ;;  %v1120_v14 = vand.u32 2147483648, %v1114_v40  ;;  %vm1119_vm4 = vcmp.eq.f32.partialorder %v1114_v40, 0.0 }
 0x742   :  { %v2094_v44 = vpop.eup %2093 }
 0x743   :  { %v1116_v13 = vmul.f32 %v2094_v44, %v1114_v40 }
 0x745   :  { %v1118_v15 = vsel %vm1117_vm3, %v1114_v40, %v1116_v13  ;;  %v753_v40 = vadd.f32 %v752_v12, %v2582_v46 }
 0x746   :  { %v1121_v16 = vsel %vm1119_vm4, %v1120_v14, %v1118_v15 }
 0x747   :  { %1990 = vpush %v1121_v16 }
 0x748   :  { %1992 = vpush %v1141_v17 }
 0x778   :  { %s1991_s21 = spop %1990 }
 0x779   :  { %v1123_v59 = vstv %s1991_s21  ;;  %s1993_s22 = spop %1992 }
 0x77a   :  { %v1124_v32 = vmul.f32 %v1123_v59, %v749_v51  ;;  %v1143_v50 = vstv %s1993_s22  ;;  %v2078_v59 = vld [vmem:[#allocation6 + $0x108] sm:$0xff]  }
 0x77b   :  { %2095 = vrsqrt.f32 %v1143_v50  ;;  %vm1146_vm5 = vcmp.eq.f32.partialorder %v1143_v50, inf  ;;  %v1149_v35 = vand.u32 2147483648, %v1143_v50  ;;  %vm1148_vm6 = vcmp.eq.f32.partialorder %v1143_v50, 0.0  ;;  %1891 = vmatpush3.bf16.msra.mxu1 %v2078_v59  ;;  %v2092_v59 = vld [vmem:[#allocation6 + $0x1f8] sm:$0xff]  }
 0x77c   :  { %v1639_v62 = vmul.f32 -1.442695, %v1124_v32  ;;  %v2079_v32 = vld [vmem:[#allocation6 + $0x110] sm:$0xff]   ;;  %1892 = vmatprep.subr.bf16.mxu1 %v2217_v1 }
 0x77e   :  { %2097 = vpow2.f32 %v1639_v62  ;;  %v2081_v62 = vld [vmem:[#allocation6 + $0x120] sm:$0xff]  }
 0x77f   :  { %1893 = vmatpush3.bf16.msra.mxu1 %v2079_v32 }
 0x780   :  { %1894 = vmatprep.subr.bf16.mxu1 %v2217_v1 }
 0x785   :  { %v2096_v61 = vpop.eup %2095 }
 0x786   :  { %v1145_v3 = vmul.f32 %v2096_v61, %v1143_v50  ;;  %v756_v61 = vpop.xlane.xlu1 %755 }
 0x787   :  { %v757_v2 = vadd.f32 %v756_v61, %v2582_v46 }
 0x788   :  { %v2098_v5 = vpop.eup %2097  ;;  %v1147_v36 = vsel %vm1146_vm5, %v1143_v50, %v1145_v3  ;;  %v2080_v50 = vld [vmem:[#allocation6 + $0x118] sm:$0xff]  }
 0x789   :  { %v1128_v33 = vadd.f32 1.0, %v2098_v5  ;;  %v1150_v6 = vsel %vm1148_vm6, %v1149_v35, %v1147_v36  ;;  %1895 = vmatpush3.bf16.msra.mxu1 %v2080_v50 }
 0x78a   :  { %1994 = vpush %v1150_v6  ;;  %1896 = vmatprep.subr.bf16.mxu1 %v2217_v1 }
 0x78b   :  { %2099 = vrcp.f32 %v1128_v33  ;;  %1996 = vpush %v1170_v9 }
 0x78d   :  { %1897 = vmatpush3.bf16.msra.mxu1 %v2081_v62 }
 0x78e   :  { %1898 = vmatprep.subr.bf16.mxu1 %v2217_v1 }
 0x791   :  { %1899 = vmatpush3.bf16.msra.mxu1 %v2082_v58 }
 0x792   :  { %1900 = vmatprep.subr.bf16.mxu1 %v2217_v1 }
 0x795   :  { %v2100_v10 = vpop.eup %2099  ;;  %1901 = vmatpush3.bf16.msra.mxu1 %v2083_v60 }
 0x796   :  { %v1131_v11 = vsub.f32 1.0, %v2100_v10  ;;  %1902 = vmatprep.subr.bf16.mxu1 %v2217_v1  ;;  %v2084_v10 = vld [vmem:[#allocation6 + $0x138] sm:$0xff]  }
 0x798   :  { %1192 = vperm.xlu0 %2013, %v1131_v11  }
 0x799   :  { %1903 = vmatpush3.bf16.msra.mxu1 %v2084_v10 }
 0x79a   :  { %1928 = vmatprep.subr.bf16.mxu1 %v2217_v1 }
 0x7bb   :  { %s1995_s23 = spop %1994 }
 0x7bc   :  { %v1152_v41 = vstv %s1995_s23  ;;  %s1997_s24 = spop %1996 }
 0x7bd   :  { %v1153_v42 = vmul.f32 %v1152_v41, %v753_v40  ;;  %v1172_v44 = vstv %s1997_s24 }
 0x7be   :  { %2101 = vrsqrt.f32 %v1172_v44  ;;  %vm1175_vm7 = vcmp.eq.f32.partialorder %v1172_v44, inf  ;;  %v1178_v15 = vand.u32 2147483648, %v1172_v44  ;;  %vm1177_vm8 = vcmp.eq.f32.partialorder %v1172_v44, 0.0 }
 0x7bf   :  { %v1640_v43 = vmul.f32 -1.442695, %v1153_v42 }
 0x7c1   :  { %2103 = vpow2.f32 %v1640_v43 }
 0x7c8   :  { %v2102_v13 = vpop.eup %2101 }
 0x7c9   :  { %v1174_v14 = vmul.f32 %v2102_v13, %v1172_v44 }
 0x7cb   :  { %v2104_v16 = vpop.eup %2103  ;;  %v1176_v17 = vsel %vm1175_vm7, %v1172_v44, %v1174_v14 }
 0x7cc   :  { %v1157_v31 = vadd.f32 1.0, %v2104_v16  ;;  %v1179_v34 = vsel %vm1177_vm8, %v1178_v15, %v1176_v17  ;;  %v2111_v15 = vld [vmem:[#allocation6] sm:$0xff]  }
 0x7cd   :  { %1998 = vpush %v1179_v34 }
 0x7ce   :  { %2105 = vrcp.f32 %v1157_v31 }
 0x7d8   :  { %v2106_v54 = vpop.eup %2105 }
 0x7d9   :  { %v1160_v51 = vsub.f32 1.0, %v2106_v54 }
 0x7db   :  { %1199 = vperm.xlu1 %2014, %v1160_v51   ;;  %v2090_v51 = vld [vmem:[#allocation6 + $0x1e8] sm:$0xff]  }
 0x7fe   :  { %s1999_s25 = spop %1998 }
 0x7ff   :  { %v1181_v3 = vstv %s1999_s25 }
 0x800   :  { %v1182_v35 = vmul.f32 %v1181_v3, %v757_v2  ;;  %v1472_v3 = vrot.slane %v2514_v4, %v2399_v47 }
 0x802   :  { %v1641_v5 = vmul.f32 -1.442695, %v1182_v35 }
 0x804   :  { %2107 = vpow2.f32 %v1641_v5 }
 0x80e   :  { %v2108_v36 = vpop.eup %2107 }
 0x80f   :  { %v1186_v33 = vadd.f32 1.0, %v2108_v36 }
 0x811   :  { %2109 = vrcp.f32 %v1186_v33 }
 0x817   :  { %v1193_v11 = vpop.permute.xlu0 %1192 }
 0x818   :  { %v1195_v40 = vmul.f32 %v1193_v11, %v2419_v53 }
 0x81a   :  { %v1196_v41 = vadd.f32 %v1195_v40, %v2567_v48 }
 0x81b   :  { %v2110_v6 = vpop.eup %2109 }
 0x81c   :  { %v1189_v9 = vsub.f32 1.0, %v2110_v6 }
 0x81e   :  { %1206 = vperm.xlu1 %2014, %v1189_v9  }
 0x85a   :  { %v1200_v12 = vpop.permute.xlu1 %1199 }
 0x85b   :  { %v1202_v46 = vmul.f32 %v1200_v12, %v2450_v8 }
 0x85d   :  { %v1203_v44 = vadd.f32 %v1202_v46, %v1196_v41 }
 0x89d   :  { %v1207_v42 = vpop.permute.xlu1 %1206 }
 0x89e   :  { %v1209_v43 = vmul.f32 %v1207_v42, %v2497_v49 }
 0x8a0   :  { %v1210_v13 = vadd.f32 %v1209_v43, %v1203_v44 }
 0x8a2   :  { %v1211_v14 = vpack.c.bf16 %v1210_v13, %v1210_v13 }
 0x8a4   :  { %1905 = vmatmul.mubr.bf16.vlgmr.msra.gmra.mrb[12].mxu1 %v1211_v14 }
 0x8a5   :  { %1929 = vmatpush3.bf16.msra.mxu1 %v2111_v15  ;;  %1944 = vmatprep.mubr.msk.bf16.mxu1 %vm2218_vm0, %v2217_v1 }
 0x8a6   :  { %1930 = vmatprep.subr.bf16.mxu1 %v2217_v1 }
 0x8a9   :  { %1931 = vmatpush3.bf16.msra.mxu1 %v2316_v18  ;;  %v1232_v18 = vrot.slane %v2514_v4, %v2383_v37  ;;  %v2087_v37 = vld [vmem:[#allocation6 + $0x1d0] sm:$0xff]  }
 0x8aa   :  { %1932 = vmatprep.subr.bf16.mxu1 %v2217_v1 }
 0x8ad   :  { %1933 = vmatpush3.bf16.msra.mxu1 %v2320_v19 }
 0x8ae   :  { %1934 = vmatprep.subr.bf16.mxu1 %v2217_v1 }
 0x8b1   :  { %1935 = vmatpush3.bf16.msra.mxu1 %v2324_v20 }
 0x8b2   :  { %1936 = vmatprep.subr.bf16.mxu1 %v2217_v1 }
 0x8b5   :  { %1937 = vmatpush3.bf16.msra.mxu1 %v2328_v21 }
 0x8b6   :  { %1938 = vmatprep.subr.bf16.mxu1 %v2217_v1 }
 0x8b9   :  { %1939 = vmatpush3.bf16.msra.mxu1 %v2332_v22 }
 0x8ba   :  { %1940 = vmatprep.subr.bf16.mxu1 %v2217_v1 }
 0x8bd   :  { %1941 = vmatpush3.bf16.msra.mxu1 %v2336_v23 }
 0x8be   :  { %1942 = vmatprep.subr.bf16.mxu1 %v2217_v1 }
 0x8c1   :  { %1943 = vmatpush3.bf16.msra.mxu1 %v2340_v24 }
 0x8c2   :  { %1968 = vmatprep.subr.bf16.mxu1 %v2217_v1 }
 0x977   :  { %v1315_v19 = vpop.f32.mrb[12].mxu1 }
 0x978   :  { %v2618_v20 = vadd.f32 %v1315_v19, %v1232_v18  ;;  %v1906_v21 = vpop.f32.mrb[13].mxu1 }
 0x979   :  { %v1318_v53 = vpop.f32.mrb[14].mxu1 }
 0x97a   :  { %v1321_v22 = vpack.c.bf16 %v2618_v20, %v2618_v20  ;;  %v1907_v8 = vpop.f32.mrb[15].mxu1 }
 0x97c   :  { %1925 = vmatmul.mubr.bf16.vlgmr.msra.gmra.mrb[24].mxu0 %v1321_v22 }
 0x97d   :  { %1949 = vmatpush3.bf16.msra.mxu0 %v2344_v25  ;;  %1964 = vmatprep.mubr.msk.bf16.mxu0 %vm2218_vm0, %v2217_v1 }
 0x97e   :  { %1950 = vmatprep.subr.bf16.mxu0 %v2217_v1 }
 0x981   :  { %1951 = vmatpush3.bf16.msra.mxu0 %v2347_v26 }
 0x982   :  { %1952 = vmatprep.subr.bf16.mxu0 %v2217_v1 }
 0x985   :  { %1953 = vmatpush3.bf16.msra.mxu0 %v2351_v27 }
 0x986   :  { %1954 = vmatprep.subr.bf16.mxu0 %v2217_v1 }
 0x989   :  { %1955 = vmatpush3.bf16.msra.mxu0 %v2355_v28 }
 0x98a   :  { %1956 = vmatprep.subr.bf16.mxu0 %v2217_v1 }
 0x98d   :  { %1957 = vmatpush3.bf16.msra.mxu0 %v2359_v29  ;;  %v2085_v29 = vld [vmem:[#allocation6 + $0x1c0] sm:$0xff]  }
 0x98e   :  { %1958 = vmatprep.subr.bf16.mxu0 %v2217_v1 }
 0x991   :  { %1959 = vmatpush3.bf16.msra.mxu0 %v2363_v30  ;;  %v2086_v30 = vld [vmem:[#allocation6 + $0x1c8] sm:$0xff]  }
 0x992   :  { %1960 = vmatprep.subr.bf16.mxu0 %v2217_v1 }
 0x995   :  { %1961 = vmatpush3.bf16.msra.mxu0 %v2425_v55  ;;  %v2088_v55 = vld [vmem:[#allocation6 + $0x1d8] sm:$0xff]  }
 0x996   :  { %1962 = vmatprep.subr.bf16.mxu0 %v2217_v1 }
 0x999   :  { %1963 = vmatpush3.bf16.msra.mxu0 %v2429_v56  ;;  %v2089_v56 = vld [vmem:[#allocation6 + $0x1e0] sm:$0xff]  }
 0xa4f   :  { %v1356_v23 = vpop.f32.mrb[24].mxu0 }
 0xa50   :  { %v1357_v24 = vadd.f32 %v1356_v23, %v2533_v52  ;;  %v1926_v25 = vpop.f32.mrb[25].mxu0 }
 0xa51   :  { %v1359_v26 = vpop.f32.mrb[26].mxu0 }
 0xa52   :  { %v1362_v27 = vpack.c.bf16 %v1357_v24, %v1357_v24  ;;  %v1927_v28 = vpop.f32.mrb[27].mxu0 }
 0xa54   :  { %1945 = vmatmul.mubr.bf16.vlgmr.msra.gmra.mrb[16].mxu1 %v1362_v27 }
 0xa55   :  { %1984 = vmatprep.mubr.msk.bf16.mxu1 %vm2218_vm0, %v2217_v1  ;;  %1969 = vmatpush3.bf16.msra.mxu1 %v2085_v29 }
 0xa56   :  { %1970 = vmatprep.subr.bf16.mxu1 %v2217_v1 }
 0xa59   :  { %1971 = vmatpush3.bf16.msra.mxu1 %v2086_v30 }
 0xa5a   :  { %1972 = vmatprep.subr.bf16.mxu1 %v2217_v1 }
 0xa5d   :  { %1973 = vmatpush3.bf16.msra.mxu1 %v2087_v37 }
 0xa5e   :  { %1974 = vmatprep.subr.bf16.mxu1 %v2217_v1 }
 0xa61   :  { %1975 = vmatpush3.bf16.msra.mxu1 %v2088_v55 }
 0xa62   :  { %1976 = vmatprep.subr.bf16.mxu1 %v2217_v1 }
 0xa65   :  { %1977 = vmatpush3.bf16.msra.mxu1 %v2089_v56 }
 0xa66   :  { %1978 = vmatprep.subr.bf16.mxu1 %v2217_v1 }
 0xa69   :  { %1979 = vmatpush3.bf16.msra.mxu1 %v2090_v51 }
 0xa6a   :  { %1980 = vmatprep.subr.bf16.mxu1 %v2217_v1 }
 0xa6d   :  { %1981 = vmatpush3.bf16.msra.mxu1 %v2091_v57 }
 0xa6e   :  { %1982 = vmatprep.subr.bf16.mxu1 %v2217_v1  ;;  %v1561_v1 = vadd.f32 %v2618_v20, %v2518_v7 }
 0xa71   :  { %1983 = vmatpush3.bf16.msra.mxu1 %v2092_v59 }
 0xb27   :  { %v1397_v49 = vpop.f32.mrb[16].mxu1 }
 0xb28   :  { %v1403_v52 = vmul.f32 %v1397_v49, %v2442_v63  ;;  %v1946_v48 = vpop.f32.mrb[17].mxu1 }
 0xb29   :  { %v1400_v16 = vpop.f32.mrb[18].mxu1 }
 0xb2a   :  { %v1404_v17 = vadd.f32 %v1403_v52, %v2446_v0  ;;  %v1947_v31 = vpop.f32.mrb[19].mxu1 }
 0xb2c   :  { %v1405_v34 = vmax.f32 %v1404_v17, 0.0 }
 0xb2e   :  { %v1406_v54 = vpack.c.bf16 %v1405_v34, %v1405_v34 }
 0xb30   :  { %1965 = vmatmul.mubr.bf16.vlgmr.msra.gmra.mrb[28].mxu0 %v1406_v54 }
 0xc03   :  { %v1441_v32 = vpop.f32.mrb[28].mxu0 }
 0xc04   :  { %v1447_v63 = vmul.f32 %v1441_v32, %v2489_v38  ;;  %v1966_v50 = vpop.f32.mrb[29].mxu0  ;;  %v1566_v38 = vrot.slane %v2514_v4, %v2395_v45 }
 0xc05   :  { %v1444_v62 = vpop.f32.mrb[30].mxu0 }
 0xc06   :  { %v1448_v0 = vadd.f32 %v1447_v63, %v2493_v39  ;;  %v1967_v58 = vpop.f32.mrb[31].mxu0 }
 0xc08   :  { %v1449_v60 = vmax.f32 %v1448_v0, 0.0 }
 0xc0a   :  { %v1450_v61 = vadd.f32 %v1449_v60, %v1357_v24 }
 0xc0c   :  { %v1451_v2 = vpack.c.bf16 %v1450_v61, %v1450_v61 }
 0xc0e   :  { %1985 = vmatmul.mubr.bf16.vlgmr.msra.gmra.mrb[20].mxu1 %v1451_v2 }
 0xce1   :  { %v1555_v35 = vpop.f32.mrb[20].mxu1 }
 0xce2   :  { %v1556_v5 = vadd.f32 %v1555_v35, %v1472_v3  ;;  %v1986_v36 = vpop.f32.mrb[21].mxu1 }
 0xce3   :  { %v1558_v33 = vpop.f32.mrb[22].mxu1 }
 0xce4   :  { %v1562_v6 = vadd.f32 %v1561_v1, %v1556_v5  ;;  %v1987_v39 = vpop.f32.mrb[23].mxu1 }
 0xce6   :  { %v1567_v9 = vmul.f32 %v1566_v38, %v1562_v6 }
 0xce8   :  { %1568 = vst [vmem:[%s2667_s5] sm:$0xff] %v1567_v9 }
 0xce9   :  { %1573 = vsyncpa [#allocation3], 1 }
 0xcea   :  { %1574 = vsyncpa [#allocation5], 1 }
 0xceb   :  { %1575 = vsyncpa [#allocation8], 1 }

</bundles_post_ra>
